<compile_context>
chip_gen: v7x
topology: tpu7x:2x2x1
jax: 0.10.0
libtpu: 0.0.40
codegen_flags: <defaults>
</compile_context>

<pallas_src>
import numpy as np
import jax
import jax.numpy as jnp
from jax.experimental import pallas as pl
from jax.experimental.pallas import tpu as pltpu


def _deepcoi_kernel(ids_ref, wf_ref, bc_ref, w1_ref, b1_ref, w2_ref, b2_ref,
                    cmt_ref, out_ref):
    K, TB, L = ids_ref.shape          # taps, batch tile, sequence length
    V, H = wf_ref.shape[1], wf_ref.shape[2]

    # ---- 1) Embedding + Conv1d('same') fused: K accumulated one-hot matmuls.
    # Sentinel ids (-1, used for the 'same' zero padding) match no vocab row,
    # so their one-hot rows are all zeros and contribute nothing.
    acc = jnp.zeros((TB * L, H), jnp.float32)
    for k in range(K):                                    # static unroll
        ids_k = ids_ref[k]                                # [TB, L] (aligned load)
        eq = (jax.lax.broadcasted_iota(jnp.int32, (TB, L, V), 2)
              == ids_k[:, :, None])                       # [TB, L, V] bool
        onehot = eq.astype(jnp.float32).reshape(TB * L, V)  # free reshape (L%8==0)
        acc = acc + jnp.dot(onehot, wf_ref[k],
                            preferred_element_type=jnp.float32)
    y = jnp.maximum(acc + bc_ref[...], 0.0)               # [TB*L, H], ReLU

    # ---- 2) MaxPooling over positions 1..L-1 (skip CLS) via iota mask ------
    y3 = y.reshape(TB, L, H)
    pos = jax.lax.broadcasted_iota(jnp.int32, (TB, L, H), 1)
    pooled = jnp.max(jnp.where(pos >= 1, y3, -jnp.inf), axis=1)   # [TB, H]

    # ---- 3) SimpleMLP classifier: Linear -> ReLU -> Linear -> sigmoid ------
    h = jnp.maximum(
        jnp.dot(pooled, w1_ref[...], preferred_element_type=jnp.float32)
        + b1_ref[...], 0.0)
    logits = (jnp.dot(h, w2_ref[...], preferred_element_type=jnp.float32)
              + b2_ref[...])
    probs = jax.nn.sigmoid(logits)                        # [TB, N]

    # ---- 4) MCM: out[b, i] = max_j probs[b, j] * CM[i, j] -------------------
    # cmt_ref holds CM^T lane-padded on the i axis to 128, so the broadcast is
    # [TB, N, 128] (lane-dense) and the reduce runs over the sublane axis.
    prod = probs[:, :, None] * cmt_ref[...][None, :, :]   # [TB, N, 128]
    out_ref[...] = jnp.max(prod, axis=1)                  # [TB, 128], unmasked vst


def prepare_params(raw, n_lane=128):
    """Convert module-layout params into kernel-friendly form (all f32)."""
    K, cin, cout = raw["wc"].shape
    HH, N = raw["w2"].shape
    n_pad = ((N + n_lane - 1) // n_lane) * n_lane
    # Fuse the frozen embedding table into the per-tap conv weights:
    #   Wf[k] = tab @ wc[k]  -> [K, V, C_out]
    wf = jnp.einsum("vh,khd->kvd", raw["tab"], raw["wc"])
    # CM transposed; only the OUTPUT class axis (i) is lane-padded to 128.
    # Padded i columns are all-zero -> their max is 0; sliced off in wrapper.
    cmt = jnp.zeros((N, n_pad), jnp.float32).at[:, :N].set(raw["cm"].T)
    return dict(
        wf=wf.astype(jnp.float32),
        bc=raw["bc"].astype(jnp.float32),
        w1=raw["w1"].astype(jnp.float32),
        b1=raw["b1"].astype(jnp.float32),
        w2=raw["w2"].astype(jnp.float32),      # [HH, N]  (no j-axis padding)
        b2=raw["b2"].astype(jnp.float32),      # [1, N]
        cmt=cmt,                               # [N, n_pad]
        n_classes=N,
        cnn_width=K,
    )


def deepcoi_forward(input_ids, kp, *, tile_b=8):
    """input_ids: [B, L] int32 token ids.  Returns [B, n_classes] float32."""
    B, L = input_ids.shape
    K = kp["cnn_width"]
    pad = K // 2
    n_pad = kp["cmt"].shape[1]
    N = kp["n_classes"]

    # On single-TC chips (v5e/v6e) tile_b=B (grid=(1,)) avoids the extra grid
    # step; tile_b=B//2 keeps both v7x TensorCores busy.
    tile_b = min(tile_b, B)
    assert B % tile_b == 0 and (tile_b % 8 == 0 or tile_b == B)

    # 'same' zero padding via sentinel ids (-1), pre-shifted per tap in the
    # wrapper so the kernel never does an unaligned sequence slice.
    ids_pad = jnp.pad(input_ids.astype(jnp.int32), ((0, 0), (pad, pad)),
                      constant_values=-1)
    ids_shift = jnp.stack([ids_pad[:, k:k + L] for k in range(K)], axis=0)  # [K, B, L]

    def _fixed(shape):
        nd = len(shape)
        return pl.BlockSpec(shape, lambda b, _nd=nd: (0,) * _nd)

    out_padded = pl.pallas_call(
        _deepcoi_kernel,
        out_shape=jax.ShapeDtypeStruct((B, n_pad), jnp.float32),
        grid=(B // tile_b,),
        in_specs=[
            pl.BlockSpec((K, tile_b, L), lambda b: (0, b, 0)),   # shifted ids
            _fixed(kp["wf"].shape),                              # fused emb+conv W
            _fixed(kp["bc"].shape),
            _fixed(kp["w1"].shape),
            _fixed(kp["b1"].shape),
            _fixed(kp["w2"].shape),
            _fixed(kp["b2"].shape),
            _fixed(kp["cmt"].shape),
        ],
        out_specs=pl.BlockSpec((tile_b, n_pad), lambda b: (b, 0)),
        compiler_params=pltpu.CompilerParams(
            dimension_semantics=("parallel",)),                  # v7x: 2 TCs
    )(ids_shift, kp["wf"], kp["bc"], kp["w1"], kp["b1"], kp["w2"], kp["b2"],
      kp["cmt"])

    return out_padded[:, :N]


def deepcoi_reference(input_ids, embed_table, raw):
    """Pure-JAX f32 reference of the same forward (for correctness check)."""
    x = embed_table[input_ids]                                  # [B, L, H]
    K = raw["wc"].shape[0]
    pad = K // 2
    L = x.shape[1]
    xp = jnp.pad(x, ((0, 0), (pad, pad), (0, 0)))
    y = jnp.zeros_like(x) + raw["bc"]
    for k in range(K):
        y = y + jnp.einsum("blh,hd->bld", xp[:, k:k + L, :], raw["wc"][k])
    y = jnp.maximum(y, 0.0)
    pooled = jnp.max(y[:, 1:, :], axis=1)
    h = jnp.maximum(pooled @ raw["w1"] + raw["b1"], 0.0)
    probs = jax.nn.sigmoid(h @ raw["w2"] + raw["b2"])
    return jnp.max(probs[:, None, :] * raw["cm"][None], axis=-1)


if __name__ == "__main__":
    # Small shapes consistent with the module.  B=16, tile_b=8 gives a real
    # 2-step parallel batch grid and TB*L = 128 rows per conv matmul tile.
    B, L, H = 16, 16, 32         # batch, seq (incl. leading CLS token), hidden
    K = 7                        # cnn_width
    HH = H // 2                  # SimpleMLP hidden
    N = 16                       # number of taxonomy names / classes
    VOCAB = 24                   # amino-acid-ish vocab

    key = jax.random.PRNGKey(0)
    ks = jax.random.split(key, 10)

    embed_table = jax.random.normal(ks[0], (VOCAB, H), jnp.float32) * 0.1
    raw = {
        "tab": embed_table,
        # Conv1d weight [C_out, C_in, K] stored channels-last as [K, C_in, C_out]
        "wc": jax.random.normal(ks[1], (K, H, H), jnp.float32) / np.sqrt(H * K),
        "bc": jax.random.normal(ks[2], (1, H), jnp.float32) * 0.01,
        # SimpleMLP (weight_norm linears == plain linears at these values)
        "w1": jax.random.normal(ks[3], (H, HH), jnp.float32) / np.sqrt(H),
        "b1": jax.random.normal(ks[4], (1, HH), jnp.float32) * 0.01,
        "w2": jax.random.normal(ks[5], (HH, N), jnp.float32) / np.sqrt(HH),
        "b2": jax.random.normal(ks[6], (1, N), jnp.float32) * 0.01,
    }
    # DAG ancestor (constraint) matrix: binary with ones on the diagonal.
    cm = (jax.random.uniform(ks[7], (N, N)) < 0.3).astype(jnp.float32)
    raw["cm"] = jnp.maximum(cm, jnp.eye(N, dtype=jnp.float32))

    input_ids = jax.random.randint(ks[8], (B, L), 0, VOCAB, dtype=jnp.int32)

    kp = prepare_params(raw)
    out = jax.block_until_ready(deepcoi_forward(input_ids, kp, tile_b=8))

    ref = deepcoi_reference(input_ids, embed_table, raw)
    np.testing.assert_allclose(np.asarray(out), np.asarray(ref),
                               rtol=1e-2, atol=1e-2)
    assert out.shape == (B, N) and out.dtype == jnp.float32

    print("KERNEL_OK")
</pallas_src>

<mosaic_0001>
module attributes {stable_mosaic.version = 11 : i64} {
  func.func @_deepcoi_kernel(%arg0: i32, %arg1: memref<7x8x16xi32, #tpu.memory_space<vmem>>, %arg2: memref<7x24x32xf32, #tpu.memory_space<vmem>>, %arg3: memref<1x32xf32, #tpu.memory_space<vmem>>, %arg4: memref<32x16xf32, #tpu.memory_space<vmem>>, %arg5: memref<1x16xf32, #tpu.memory_space<vmem>>, %arg6: memref<16x16xf32, #tpu.memory_space<vmem>>, %arg7: memref<1x16xf32, #tpu.memory_space<vmem>>, %arg8: memref<16x128xf32, #tpu.memory_space<vmem>>, %arg9: memref<8x128xf32, #tpu.memory_space<vmem>>) attributes {dimension_semantics = [#tpu.dimension_semantics<parallel>], iteration_bounds = array<i64: 2>, scalar_prefetch = 0 : i64, scratch_operands = 0 : i64, tpu.core_type = #tpu.core_type<tc>, window_params = [{transform_indices = @transform_0, window_bounds = array<i64: 7, 8, 16>}, {pipeline_mode = #tpu.pipeline_mode<synchronous>, transform_indices = @transform_1, window_bounds = array<i64: 7, 24, 32>}, {pipeline_mode = #tpu.pipeline_mode<synchronous>, transform_indices = @transform_2, window_bounds = array<i64: 1, 32>}, {pipeline_mode = #tpu.pipeline_mode<synchronous>, transform_indices = @transform_3, window_bounds = array<i64: 32, 16>}, {pipeline_mode = #tpu.pipeline_mode<synchronous>, transform_indices = @transform_4, window_bounds = array<i64: 1, 16>}, {pipeline_mode = #tpu.pipeline_mode<synchronous>, transform_indices = @transform_5, window_bounds = array<i64: 16, 16>}, {pipeline_mode = #tpu.pipeline_mode<synchronous>, transform_indices = @transform_6, window_bounds = array<i64: 1, 16>}, {pipeline_mode = #tpu.pipeline_mode<synchronous>, transform_indices = @transform_7, window_bounds = array<i64: 16, 128>}, {transform_indices = @transform_8, window_bounds = array<i64: 8, 128>}]} {
    %cst = arith.constant 0.000000e+00 : f32
    %0 = vector.broadcast %cst : f32 to vector<128x32xf32>
    %c0 = arith.constant 0 : index
    %c0_0 = arith.constant 0 : index
    %c0_1 = arith.constant 0 : index
    %1 = vector.load %arg1[%c0, %c0_0, %c0_1] : memref<7x8x16xi32, #tpu.memory_space<vmem>>, vector<1x8x16xi32>
    %2 = vector.shape_cast %1 : vector<1x8x16xi32> to vector<8x16xi32>
    %3 = tpu.iota {dimensions = array<i32: 2>} : vector<8x16x24xi32>
    %4 = vector.shape_cast %2 : vector<8x16xi32> to vector<8x16x1xi32>
    %5 = vector.broadcast %4 : vector<8x16x1xi32> to vector<8x16x24xi32>
    %6 = arith.cmpi eq, %3, %5 : vector<8x16x24xi32>
    %7 = arith.extui %6 : vector<8x16x24xi1> to vector<8x16x24xi32>
    %8 = arith.sitofp %7 : vector<8x16x24xi32> to vector<8x16x24xf32>
    %9 = vector.shape_cast %8 : vector<8x16x24xf32> to vector<128x24xf32>
    %c0_2 = arith.constant 0 : index
    %c0_3 = arith.constant 0 : index
    %c0_4 = arith.constant 0 : index
    %10 = vector.load %arg2[%c0_2, %c0_3, %c0_4] : memref<7x24x32xf32, #tpu.memory_space<vmem>>, vector<1x24x32xf32>
    %11 = vector.shape_cast %10 : vector<1x24x32xf32> to vector<24x32xf32>
    %cst_5 = arith.constant dense<0.000000e+00> : vector<128x32xf32>
    %12 = tpu.matmul %9, %11, %cst_5 {dimension_numbers = #tpu.dot_dimension_numbers<[1], [0], [0], [1], [0, 0, 1, 1], [], []>} : vector<128x24xf32>, vector<24x32xf32>, vector<128x32xf32> -> vector<128x32xf32>
    %13 = arith.addf %0, %12 : vector<128x32xf32>
    %c1 = arith.constant 1 : index
    %c0_6 = arith.constant 0 : index
    %c0_7 = arith.constant 0 : index
    %14 = vector.load %arg1[%c1, %c0_6, %c0_7] : memref<7x8x16xi32, #tpu.memory_space<vmem>>, vector<1x8x16xi32>
    %15 = vector.shape_cast %14 : vector<1x8x16xi32> to vector<8x16xi32>
    %16 = tpu.iota {dimensions = array<i32: 2>} : vector<8x16x24xi32>
    %17 = vector.shape_cast %15 : vector<8x16xi32> to vector<8x16x1xi32>
    %18 = vector.broadcast %17 : vector<8x16x1xi32> to vector<8x16x24xi32>
    %19 = arith.cmpi eq, %16, %18 : vector<8x16x24xi32>
    %20 = arith.extui %19 : vector<8x16x24xi1> to vector<8x16x24xi32>
    %21 = arith.sitofp %20 : vector<8x16x24xi32> to vector<8x16x24xf32>
    %22 = vector.shape_cast %21 : vector<8x16x24xf32> to vector<128x24xf32>
    %c1_8 = arith.constant 1 : index
    %c0_9 = arith.constant 0 : index
    %c0_10 = arith.constant 0 : index
    %23 = vector.load %arg2[%c1_8, %c0_9, %c0_10] : memref<7x24x32xf32, #tpu.memory_space<vmem>>, vector<1x24x32xf32>
    %24 = vector.shape_cast %23 : vector<1x24x32xf32> to vector<24x32xf32>
    %cst_11 = arith.constant dense<0.000000e+00> : vector<128x32xf32>
    %25 = tpu.matmul %22, %24, %cst_11 {dimension_numbers = #tpu.dot_dimension_numbers<[1], [0], [0], [1], [0, 0, 1, 1], [], []>} : vector<128x24xf32>, vector<24x32xf32>, vector<128x32xf32> -> vector<128x32xf32>
    %26 = arith.addf %13, %25 : vector<128x32xf32>
    %c2 = arith.constant 2 : index
    %c0_12 = arith.constant 0 : index
    %c0_13 = arith.constant 0 : index
    %27 = vector.load %arg1[%c2, %c0_12, %c0_13] : memref<7x8x16xi32, #tpu.memory_space<vmem>>, vector<1x8x16xi32>
    %28 = vector.shape_cast %27 : vector<1x8x16xi32> to vector<8x16xi32>
    %29 = tpu.iota {dimensions = array<i32: 2>} : vector<8x16x24xi32>
    %30 = vector.shape_cast %28 : vector<8x16xi32> to vector<8x16x1xi32>
    %31 = vector.broadcast %30 : vector<8x16x1xi32> to vector<8x16x24xi32>
    %32 = arith.cmpi eq, %29, %31 : vector<8x16x24xi32>
    %33 = arith.extui %32 : vector<8x16x24xi1> to vector<8x16x24xi32>
    %34 = arith.sitofp %33 : vector<8x16x24xi32> to vector<8x16x24xf32>
    %35 = vector.shape_cast %34 : vector<8x16x24xf32> to vector<128x24xf32>
    %c2_14 = arith.constant 2 : index
    %c0_15 = arith.constant 0 : index
    %c0_16 = arith.constant 0 : index
    %36 = vector.load %arg2[%c2_14, %c0_15, %c0_16] : memref<7x24x32xf32, #tpu.memory_space<vmem>>, vector<1x24x32xf32>
    %37 = vector.shape_cast %36 : vector<1x24x32xf32> to vector<24x32xf32>
    %cst_17 = arith.constant dense<0.000000e+00> : vector<128x32xf32>
    %38 = tpu.matmul %35, %37, %cst_17 {dimension_numbers = #tpu.dot_dimension_numbers<[1], [0], [0], [1], [0, 0, 1, 1], [], []>} : vector<128x24xf32>, vector<24x32xf32>, vector<128x32xf32> -> vector<128x32xf32>
    %39 = arith.addf %26, %38 : vector<128x32xf32>
    %c3 = arith.constant 3 : index
    %c0_18 = arith.constant 0 : index
    %c0_19 = arith.constant 0 : index
    %40 = vector.load %arg1[%c3, %c0_18, %c0_19] : memref<7x8x16xi32, #tpu.memory_space<vmem>>, vector<1x8x16xi32>
    %41 = vector.shape_cast %40 : vector<1x8x16xi32> to vector<8x16xi32>
    %42 = tpu.iota {dimensions = array<i32: 2>} : vector<8x16x24xi32>
    %43 = vector.shape_cast %41 : vector<8x16xi32> to vector<8x16x1xi32>
    %44 = vector.broadcast %43 : vector<8x16x1xi32> to vector<8x16x24xi32>
    %45 = arith.cmpi eq, %42, %44 : vector<8x16x24xi32>
    %46 = arith.extui %45 : vector<8x16x24xi1> to vector<8x16x24xi32>
    %47 = arith.sitofp %46 : vector<8x16x24xi32> to vector<8x16x24xf32>
    %48 = vector.shape_cast %47 : vector<8x16x24xf32> to vector<128x24xf32>
    %c3_20 = arith.constant 3 : index
    %c0_21 = arith.constant 0 : index
    %c0_22 = arith.constant 0 : index
    %49 = vector.load %arg2[%c3_20, %c0_21, %c0_22] : memref<7x24x32xf32, #tpu.memory_space<vmem>>, vector<1x24x32xf32>
    %50 = vector.shape_cast %49 : vector<1x24x32xf32> to vector<24x32xf32>
    %cst_23 = arith.constant dense<0.000000e+00> : vector<128x32xf32>
    %51 = tpu.matmul %48, %50, %cst_23 {dimension_numbers = #tpu.dot_dimension_numbers<[1], [0], [0], [1], [0, 0, 1, 1], [], []>} : vector<128x24xf32>, vector<24x32xf32>, vector<128x32xf32> -> vector<128x32xf32>
    %52 = arith.addf %39, %51 : vector<128x32xf32>
    %c4 = arith.constant 4 : index
    %c0_24 = arith.constant 0 : index
    %c0_25 = arith.constant 0 : index
    %53 = vector.load %arg1[%c4, %c0_24, %c0_25] : memref<7x8x16xi32, #tpu.memory_space<vmem>>, vector<1x8x16xi32>
    %54 = vector.shape_cast %53 : vector<1x8x16xi32> to vector<8x16xi32>
    %55 = tpu.iota {dimensions = array<i32: 2>} : vector<8x16x24xi32>
    %56 = vector.shape_cast %54 : vector<8x16xi32> to vector<8x16x1xi32>
    %57 = vector.broadcast %56 : vector<8x16x1xi32> to vector<8x16x24xi32>
    %58 = arith.cmpi eq, %55, %57 : vector<8x16x24xi32>
    %59 = arith.extui %58 : vector<8x16x24xi1> to vector<8x16x24xi32>
    %60 = arith.sitofp %59 : vector<8x16x24xi32> to vector<8x16x24xf32>
    %61 = vector.shape_cast %60 : vector<8x16x24xf32> to vector<128x24xf32>
    %c4_26 = arith.constant 4 : index
    %c0_27 = arith.constant 0 : index
    %c0_28 = arith.constant 0 : index
    %62 = vector.load %arg2[%c4_26, %c0_27, %c0_28] : memref<7x24x32xf32, #tpu.memory_space<vmem>>, vector<1x24x32xf32>
    %63 = vector.shape_cast %62 : vector<1x24x32xf32> to vector<24x32xf32>
    %cst_29 = arith.constant dense<0.000000e+00> : vector<128x32xf32>
    %64 = tpu.matmul %61, %63, %cst_29 {dimension_numbers = #tpu.dot_dimension_numbers<[1], [0], [0], [1], [0, 0, 1, 1], [], []>} : vector<128x24xf32>, vector<24x32xf32>, vector<128x32xf32> -> vector<128x32xf32>
    %65 = arith.addf %52, %64 : vector<128x32xf32>
    %c5 = arith.constant 5 : index
    %c0_30 = arith.constant 0 : index
    %c0_31 = arith.constant 0 : index
    %66 = vector.load %arg1[%c5, %c0_30, %c0_31] : memref<7x8x16xi32, #tpu.memory_space<vmem>>, vector<1x8x16xi32>
    %67 = vector.shape_cast %66 : vector<1x8x16xi32> to vector<8x16xi32>
    %68 = tpu.iota {dimensions = array<i32: 2>} : vector<8x16x24xi32>
    %69 = vector.shape_cast %67 : vector<8x16xi32> to vector<8x16x1xi32>
    %70 = vector.broadcast %69 : vector<8x16x1xi32> to vector<8x16x24xi32>
    %71 = arith.cmpi eq, %68, %70 : vector<8x16x24xi32>
    %72 = arith.extui %71 : vector<8x16x24xi1> to vector<8x16x24xi32>
    %73 = arith.sitofp %72 : vector<8x16x24xi32> to vector<8x16x24xf32>
    %74 = vector.shape_cast %73 : vector<8x16x24xf32> to vector<128x24xf32>
    %c5_32 = arith.constant 5 : index
    %c0_33 = arith.constant 0 : index
    %c0_34 = arith.constant 0 : index
    %75 = vector.load %arg2[%c5_32, %c0_33, %c0_34] : memref<7x24x32xf32, #tpu.memory_space<vmem>>, vector<1x24x32xf32>
    %76 = vector.shape_cast %75 : vector<1x24x32xf32> to vector<24x32xf32>
    %cst_35 = arith.constant dense<0.000000e+00> : vector<128x32xf32>
    %77 = tpu.matmul %74, %76, %cst_35 {dimension_numbers = #tpu.dot_dimension_numbers<[1], [0], [0], [1], [0, 0, 1, 1], [], []>} : vector<128x24xf32>, vector<24x32xf32>, vector<128x32xf32> -> vector<128x32xf32>
    %78 = arith.addf %65, %77 : vector<128x32xf32>
    %c6 = arith.constant 6 : index
    %c0_36 = arith.constant 0 : index
    %c0_37 = arith.constant 0 : index
    %79 = vector.load %arg1[%c6, %c0_36, %c0_37] : memref<7x8x16xi32, #tpu.memory_space<vmem>>, vector<1x8x16xi32>
    %80 = vector.shape_cast %79 : vector<1x8x16xi32> to vector<8x16xi32>
    %81 = tpu.iota {dimensions = array<i32: 2>} : vector<8x16x24xi32>
    %82 = vector.shape_cast %80 : vector<8x16xi32> to vector<8x16x1xi32>
    %83 = vector.broadcast %82 : vector<8x16x1xi32> to vector<8x16x24xi32>
    %84 = arith.cmpi eq, %81, %83 : vector<8x16x24xi32>
    %85 = arith.extui %84 : vector<8x16x24xi1> to vector<8x16x24xi32>
    %86 = arith.sitofp %85 : vector<8x16x24xi32> to vector<8x16x24xf32>
    %87 = vector.shape_cast %86 : vector<8x16x24xf32> to vector<128x24xf32>
    %c6_38 = arith.constant 6 : index
    %c0_39 = arith.constant 0 : index
    %c0_40 = arith.constant 0 : index
    %88 = vector.load %arg2[%c6_38, %c0_39, %c0_40] : memref<7x24x32xf32, #tpu.memory_space<vmem>>, vector<1x24x32xf32>
    %89 = vector.shape_cast %88 : vector<1x24x32xf32> to vector<24x32xf32>
    %cst_41 = arith.constant dense<0.000000e+00> : vector<128x32xf32>
    %90 = tpu.matmul %87, %89, %cst_41 {dimension_numbers = #tpu.dot_dimension_numbers<[1], [0], [0], [1], [0, 0, 1, 1], [], []>} : vector<128x24xf32>, vector<24x32xf32>, vector<128x32xf32> -> vector<128x32xf32>
    %91 = arith.addf %78, %90 : vector<128x32xf32>
    %c0_42 = arith.constant 0 : index
    %c0_43 = arith.constant 0 : index
    %92 = vector.load %arg3[%c0_42, %c0_43] : memref<1x32xf32, #tpu.memory_space<vmem>>, vector<1x32xf32>
    %93 = vector.broadcast %92 : vector<1x32xf32> to vector<128x32xf32>
    %94 = arith.addf %91, %93 : vector<128x32xf32>
    %cst_44 = arith.constant 0.000000e+00 : f32
    %95 = vector.broadcast %cst_44 : f32 to vector<128x32xf32>
    %96 = arith.maximumf %94, %95 : vector<128x32xf32>
    %97 = vector.shape_cast %96 : vector<128x32xf32> to vector<8x16x32xf32>
    %98 = tpu.iota {dimensions = array<i32: 1>} : vector<8x16x32xi32>
    %c1_i32 = arith.constant 1 : i32
    %99 = vector.broadcast %c1_i32 : i32 to vector<8x16x32xi32>
    %100 = arith.cmpi sge, %98, %99 : vector<8x16x32xi32>
    %cst_45 = arith.constant 0xFF800000 : f32
    %101 = vector.broadcast %cst_45 : f32 to vector<8x16x32xf32>
    %102 = arith.select %100, %97, %101 : vector<8x16x32xi1>, vector<8x16x32xf32>
    %cst_46 = arith.constant dense<0xFF800000> : vector<8x32xf32>
    %103 = vector.multi_reduction <maximumf>, %102, %cst_46 [1] : vector<8x16x32xf32> to vector<8x32xf32>
    %c0_47 = arith.constant 0 : index
    %c0_48 = arith.constant 0 : index
    %104 = vector.load %arg4[%c0_47, %c0_48] : memref<32x16xf32, #tpu.memory_space<vmem>>, vector<32x16xf32>
    %cst_49 = arith.constant dense<0.000000e+00> : vector<8x16xf32>
    %105 = tpu.matmul %103, %104, %cst_49 {dimension_numbers = #tpu.dot_dimension_numbers<[1], [0], [0], [1], [0, 0, 1, 1], [], []>} : vector<8x32xf32>, vector<32x16xf32>, vector<8x16xf32> -> vector<8x16xf32>
    %c0_50 = arith.constant 0 : index
    %c0_51 = arith.constant 0 : index
    %106 = vector.load %arg5[%c0_50, %c0_51] : memref<1x16xf32, #tpu.memory_space<vmem>>, vector<1x16xf32>
    %107 = vector.broadcast %106 : vector<1x16xf32> to vector<8x16xf32>
    %108 = arith.addf %105, %107 : vector<8x16xf32>
    %cst_52 = arith.constant 0.000000e+00 : f32
    %109 = vector.broadcast %cst_52 : f32 to vector<8x16xf32>
    %110 = arith.maximumf %108, %109 : vector<8x16xf32>
    %c0_53 = arith.constant 0 : index
    %c0_54 = arith.constant 0 : index
    %111 = vector.load %arg6[%c0_53, %c0_54] : memref<16x16xf32, #tpu.memory_space<vmem>>, vector<16x16xf32>
    %cst_55 = arith.constant dense<0.000000e+00> : vector<8x16xf32>
    %112 = tpu.matmul %110, %111, %cst_55 {dimension_numbers = #tpu.dot_dimension_numbers<[1], [0], [0], [1], [0, 0, 1, 1], [], []>} : vector<8x16xf32>, vector<16x16xf32>, vector<8x16xf32> -> vector<8x16xf32>
    %c0_56 = arith.constant 0 : index
    %c0_57 = arith.constant 0 : index
    %113 = vector.load %arg7[%c0_56, %c0_57] : memref<1x16xf32, #tpu.memory_space<vmem>>, vector<1x16xf32>
    %114 = vector.broadcast %113 : vector<1x16xf32> to vector<8x16xf32>
    %115 = arith.addf %112, %114 : vector<8x16xf32>
    %116 = arith.negf %115 : vector<8x16xf32>
    %117 = math.exp %116 : vector<8x16xf32>
    %cst_58 = arith.constant 1.000000e+00 : f32
    %118 = vector.broadcast %cst_58 : f32 to vector<8x16xf32>
    %119 = arith.addf %118, %117 : vector<8x16xf32>
    %120 = arith.divf %118, %119 : vector<8x16xf32>
    %121 = vector.shape_cast %120 : vector<8x16xf32> to vector<8x16x1xf32>
    %c0_59 = arith.constant 0 : index
    %c0_60 = arith.constant 0 : index
    %122 = vector.load %arg8[%c0_59, %c0_60] : memref<16x128xf32, #tpu.memory_space<vmem>>, vector<16x128xf32>
    %123 = vector.shape_cast %122 : vector<16x128xf32> to vector<1x16x128xf32>
    %124 = vector.broadcast %121 : vector<8x16x1xf32> to vector<8x16x128xf32>
    %125 = vector.broadcast %123 : vector<1x16x128xf32> to vector<8x16x128xf32>
    %126 = arith.mulf %124, %125 : vector<8x16x128xf32>
    %cst_61 = arith.constant dense<0xFF800000> : vector<8x128xf32>
    %127 = vector.multi_reduction <maximumf>, %126, %cst_61 [1] : vector<8x16x128xf32> to vector<8x128xf32>
    %c0_62 = arith.constant 0 : index
    %c0_63 = arith.constant 0 : index
    %128 = vector.load %arg9[%c0_62, %c0_63] : memref<8x128xf32, #tpu.memory_space<vmem>>, vector<8x128xf32>
    tpu.vector_store %arg9[%c0_62, %c0_63], %127 {strides = array<i32>} : memref<8x128xf32, #tpu.memory_space<vmem>>, vector<8x128xf32>,
    return
  }
  func.func @transform_0(%arg0: i32) -> (i32, i32, i32) {
    %c0_i32 = arith.constant 0 : i32
    %c0_i32_0 = arith.constant 0 : i32
    %c0_i32_1 = arith.constant 0 : i32
    return %c0_i32, %arg0, %c0_i32_0 : i32, i32, i32
  }
  func.func @transform_1(%arg0: i32) -> (i32, i32, i32) {
    %c0_i32 = arith.constant 0 : i32
    %c0_i32_0 = arith.constant 0 : i32
    %c0_i32_1 = arith.constant 0 : i32
    %c0_i32_2 = arith.constant 0 : i32
    return %c0_i32, %c0_i32_0, %c0_i32_1 : i32, i32, i32
  }
  func.func @transform_2(%arg0: i32) -> (i32, i32) {
    %c0_i32 = arith.constant 0 : i32
    %c0_i32_0 = arith.constant 0 : i32
    %c0_i32_1 = arith.constant 0 : i32
    return %c0_i32, %c0_i32_0 : i32, i32
  }
  func.func @transform_3(%arg0: i32) -> (i32, i32) {
    %c0_i32 = arith.constant 0 : i32
    %c0_i32_0 = arith.constant 0 : i32
    %c0_i32_1 = arith.constant 0 : i32
    return %c0_i32, %c0_i32_0 : i32, i32
  }
  func.func @transform_4(%arg0: i32) -> (i32, i32) {
    %c0_i32 = arith.constant 0 : i32
    %c0_i32_0 = arith.constant 0 : i32
    %c0_i32_1 = arith.constant 0 : i32
    return %c0_i32, %c0_i32_0 : i32, i32
  }
  func.func @transform_5(%arg0: i32) -> (i32, i32) {
    %c0_i32 = arith.constant 0 : i32
    %c0_i32_0 = arith.constant 0 : i32
    %c0_i32_1 = arith.constant 0 : i32
    return %c0_i32, %c0_i32_0 : i32, i32
  }
  func.func @transform_6(%arg0: i32) -> (i32, i32) {
    %c0_i32 = arith.constant 0 : i32
    %c0_i32_0 = arith.constant 0 : i32
    %c0_i32_1 = arith.constant 0 : i32
    return %c0_i32, %c0_i32_0 : i32, i32
  }
  func.func @transform_7(%arg0: i32) -> (i32, i32) {
    %c0_i32 = arith.constant 0 : i32
    %c0_i32_0 = arith.constant 0 : i32
    %c0_i32_1 = arith.constant 0 : i32
    return %c0_i32, %c0_i32_0 : i32, i32
  }
  func.func @transform_8(%arg0: i32) -> (i32, i32) {
    %c0_i32 = arith.constant 0 : i32
    %c0_i32_0 = arith.constant 0 : i32
    return %arg0, %c0_i32 : i32, i32
  }
}

</mosaic_0001>

<bundles_post_ra>
// kernel: tpu_custom_call.1
= control target key start
LH: loop header
LB: loop body
LE: loop exit
PB: predicated region body
PF: predicated region fallthrough
CT: control target
= control target key end

     0   :  { %13 = vsyncpa [#allocation3], 0  ;;  %s5205_s0 = inlined_call_operand.hbm [shape: s32[7,16,16], index: 0, kind: input, shape index: {}]   ;;  %s5206_s1 = inlined_call_operand.hbm [shape: f32[7,24,32], index: 1, kind: input, shape index: {}]   ;;  %s5207_s2 = inlined_call_operand.vmem [shape: f32[1,32], index: 2, kind: input, shape index: {}]   ;;  %s5208_s3 = inlined_call_operand.vmem [shape: f32[32,16], index: 3, kind: input, shape index: {}]   ;;  %s5209_s4 = inlined_call_operand.vmem [shape: f32[1,16], index: 4, kind: input, shape index: {}]   ;;  %s5210_s5 = inlined_call_operand.vmem [shape: f32[16,16], index: 5, kind: input, shape index: {}]   ;;  %s5211_s6 = inlined_call_operand.vmem [shape: f32[1,16], index: 6, kind: input, shape index: {}]   ;;  %s5212_s7 = inlined_call_operand.vmem [shape: f32[16,128], index: 7, kind: input, shape index: {}]   ;;  %s5213_s8 = inlined_call_operand.hbm [shape: f32[16,128], index: 8, kind: output, shape index: {}]  }
   0x1   :  { %15 = vsyncpa [#allocation3 + $0x1], 0 }
   0x2   :  { %16 = vsyncpa [#allocation6], 0 }
   0x3   :  { %17 = vsyncpa [#allocation4], 0 }
   0x4   :  { %19 = vsyncpa [#allocation4 + $0x1], 0  ;;  %s4373_s27 = smov 0   ;;  %s4375_s28 = smov 0  }
   0x5   :  { %s4377_s29 = smov 0   ;;  %s4379_s30 = smov 0  }
   0x6 LB: > { %5221 = sst [smem:[#allocation11_spill]] %s4313_s29  ;;  %s4394_s9 = sadd.s32 4294967295, %s4317_s30   ;;  %s4317_s30 = sphi %s4379_s30, %s5245_s30   ;;  %s4313_s29 = sphi %s4377_s29, %s5242_s29   ;;  %s4309_s28 = sphi %s4375_s28, %s5244_s28   ;;  %s4305_s27 = sphi %s4373_s27, %s5243_s27  }
   0x7   : > { %s3365_s10 = sadd.s32 4294967294, %s4317_s30   ;;  %s4398_s11 = sadd.s32 1, %s4317_s30  }
   0x8   : > { %s32_s12 = sadd.s32 1, %s4313_s29  ;;  %s29_s13 = ssub.s32 %s4317_s30, %s4398_s11 }
   0x9   : > { %p39_p0 = scmp.ne.s32.totalorder %s4313_s29, %s4309_s28  ;;  %p30_p1 = scmp.eq.s32.totalorder %s29_s13, 0 }
   0xa   : > { %p40_p2 = scmp.eq.s32.totalorder %s4317_s30, 0  ;;  %p45_p3 = scmp.ne.s32.totalorder %s4309_s28, %s4305_s27 }
   0xb   : > { %p5214_p4 = scmp.eq.s32.totalorder %s4394_s9, 0  ;;  %p216_p7 = scmp.eq.s32.totalorder %s4394_s9, 1 }
   0xc   : > { %s4410_s14 = scalar_select %p30_p1, %s4313_s29, %s32_s12  }
   0xd   : > { %p4412_p5 = por %p40_p2, %p39_p0  ;;  %p4418_p6 = por %p5214_p4, %p45_p3 }
   0xe   : > { %5222 = sst [smem:[#allocation12_spill]] %s4410_s14  ;;  %p222_p8 = scmp.eq.s32.totalorder %s3365_s10, 1 }
   0xf   : > { %s5223_s15 = scalar_select %p4412_p5, 1, 0 }
  0x10   : > { %s5224_s16 = scalar_select %p4418_p6, 1, 0 }
  0x11   : > { %p3366_p9 = scmp.ge.s32.totalorder %s4317_s30, 1  ;;  %p229_p10 = scmp.lt.s32.totalorder %s4317_s30, 3 }
  0x12   : > { %p4425_p11 = por %p216_p7, %p39_p0  ;;  %p4429_p12 = por %p222_p8, %p45_p3 }
  0x13   : > { %p4433_p13 = pnand %p3366_p9, %p229_p10  ;;  %s4319_s20 = smov [#allocation5]  }
  0x14   : > { %s5225_s17 = scalar_select %p4425_p11, 1, 0 }
  0x15   : > { %s5226_s18 = scalar_select %p4429_p12, 1, 0 }
  0x16   : > { %s5227_s19 = scalar_select %p4433_p13, 1, 0 }
  0x17   : > { %p4129_p1 = pneg %p4433_p13  ;;  %s241_s21 = sshll.u32 %s4319_s20, 4  ;;  %s242_s21 = int_to_ptr.vmem [resolvable:$true] %s241_s21 }
  0x18   : > { %s273_s23 = sand.u32 1, %s4313_s29   ;;  %s4189_s26 = scalar_lea.hbm %s5206_s1, 2688 }
  0x19   : > { %p4441_p2 = pnand %p4129_p1, %p5214_p4  ;;  %p4190_p7 = scmp.ne.s32.totalorder %s5206_s1, %s4189_s26 }
  0x1a   : > { %p4196_p1 = scmp.lt.u32.totalorder %s4189_s26, %s5206_s1 }
  0x1b   : > { %p4191_p8 = pneg %p4441_p2 }
  0x1d   : > { %p4192_p9 = pnand %p4191_p8, %p4190_p7 }
  0x1f   : > { %p4193_p10 = pneg %p4192_p9 }
  0x21   : > { %p4198_p4 = pnand %p4196_p1, %p4193_p10 }
  0x23   : > { %4201 = shalt.err (!%p4198_p4)
}
  0x24   : > { %s4202_s14 = scalar_lea.vmem %s242_s21, 2688  ;;  %p4210_p11 = scmp.lt.s32.totalorder %s242_s21, %s242_s21 }
  0x25   : > { %p4203_p0 = scmp.ne.s32.totalorder %s242_s21, %s4202_s14  ;;  %p4211_p6 = scmp.lt.s32.totalorder %s4202_s14, %s4202_s14 }
  0x27   : > { %p4205_p3 = pnand %p4203_p0, %p4191_p8  ;;  %p4212_p13 = por %p4211_p6, %p4210_p11 }
  0x29   : > { %p4206_p12 = pneg %p4205_p3 }
  0x2b   : > { %p4213_p5 = pnand %p4212_p13, %p4206_p12 }
  0x2d   : > { %4216 = shalt.err (!%p4213_p5)
}
  0x2e   : > { %s5219_s24 = smov 128   ;;  %s5220_s25 = smov 8  }
  0x2f   : > { %4132 = dma.hbm_to_vmem [thread:$0]  (!%p4441_p2), %s5206_s1, 2688, %s242_s21, [#allocation6], %s5219_s24, %s5219_s24, %s5220_s25  }
  0x30   : > { %p5229_p4 = scmp.ne.s32.totalorder %s5223_s15, 0  ;;  %p5230_p0 = scmp.lt.s32.totalorder %s4317_s30, 2 }
  0x31   : > { %s4119_s12 = smul.u32 56, %s273_s23  ;;  %s3369_s13 = sshll.u32 %s4317_s30, 7 }
  0x32   : > { %p4471_p3 = pnand %p5230_p0, %p5229_p4  ;;  %s4479_s22 = scalar_lea.hbm %s5205_s0, %s3369_s13 }
  0x33   : > { %s277_s21 = scalar_lea.vmem [#allocation2], %s4119_s12  ;;  %s4483_s26 = scalar_lea.sflag [#allocation3], %s273_s23 }
  0x34   : > { %s283_s15 = sshll.u32 %s277_s21, 4  ;;  %s4217_s10 = scalar_lea.hbm %s4479_s22, 896  ;;  %s4481_s15 = int_to_ptr.vmem [resolvable:$true] %s283_s15 }
  0x35   : > { %p4218_p5 = scmp.ne.s32.totalorder %s4479_s22, %s4217_s10  ;;  %p4219_p6 = pneg %p4471_p3 }
  0x36   : > { %s4222_s20 = scalar_lea.hbm %s5205_s0, 1792  ;;  %p4223_p13 = scmp.lt.u32.totalorder %s4479_s22, %s5205_s0 }
  0x37   : > { %p4220_p11 = pnand %p4219_p6, %p4218_p5  ;;  %p4224_p2 = scmp.lt.u32.totalorder %s4222_s20, %s4217_s10 }
  0x38   : > { %p4226_p8 = scmp.lt.u32.totalorder %s4217_s10, %s4479_s22 }
  0x39   : > { %p4221_p12 = pneg %p4220_p11  ;;  %p4225_p7 = por %p4224_p2, %p4223_p13 }
  0x3b   : > { %p4227_p9 = por %p4226_p8, %p4225_p7 }
  0x3d   : > { %p4228_p10 = pnand %p4227_p9, %p4221_p12 }
  0x3f   : > { %4231 = shalt.err (!%p4228_p10)
}
  0x40   : > { %s4232_s23 = scalar_lea.vmem %s4481_s15, 896  ;;  %s4322_s12 = smov [#allocation2]  }
  0x41   : > { %p4233_p1 = scmp.ne.s32.totalorder %s4481_s15, %s4232_s23  ;;  %s4237_s21 = sshll.u32 %s4322_s12, 4  ;;  %s4238_s21 = int_to_ptr.vmem [resolvable:$false] %s4237_s21 }
  0x42   : > { %s4239_s24 = scalar_lea.vmem %s4238_s21, 1792  ;;  %p4240_p5 = scmp.lt.s32.totalorder %s4481_s15, %s4238_s21 }
  0x43   : > { %p4235_p4 = pnand %p4233_p1, %p4219_p6  ;;  %p4241_p11 = scmp.lt.s32.totalorder %s4239_s24, %s4232_s23 }
  0x45   : > { %p4236_p0 = pneg %p4235_p4  ;;  %p4242_p13 = por %p4241_p11, %p4240_p5 }
  0x47   : > { %p4243_p2 = pnand %p4242_p13, %p4236_p0 }
  0x49   : > { %4246 = shalt.err (!%p4243_p2)
}
  0x4a   : > { %s4323_s25 = smov 256   ;;  %s5232_s10 = smov 8  }
  0x4b   : > { %s5233_s29 = smov 128   ;;  %p5234_p6 = scmp.ne.s32.totalorder %s5227_s19, 0 }
  0x4c   : > { %4136 = dma.hbm_to_vmem [thread:$0]  (!%p4471_p3), %s4479_s22, 896, %s4481_s15, %s4483_s26, %s4323_s25, %s5233_s29, %s5232_s10  }
  0x4d   : > { %295 = sbr.rel (%p5234_p6) target bundleno = 1301 (0x515), region = 52  ;;  %s4516_s13 = sand.u32 (!%p5234_p6), 1, %s4309_s28  }
  0x4e   : > { %s4120_s20 = smul.u32 (!%p5234_p6), 56, %s4516_s13  ;;  %s298_s23 = scalar_lea.sflag (!%p5234_p6), [#allocation3], %s4516_s13 }
  0x4f   : > { %p5235_p12 = scmp.ne.s32.totalorder (!%p5234_p6), %s5224_s16, 0 }
  0x50   : > { %s4520_s12 = scalar_lea.vmem (!%p5234_p6), [#allocation2], %s4120_s20 }
  0x54   : > { %4292 = dma.done.wait (%p5235_p12), %s298_s23, 896  }
  0x55   : > { %4294 = vsyncadd (%p5235_p12), %s298_s23, 4294966400  ;;  %p5236_p3 = scmp.eq.s32.totalorder %s4394_s9, 0 }
  0x57   : > { %4296 = dma.done.wait (%p5236_p3), [#allocation6], 2688   ;;  %p5237_p7 = pmov %p5236_p3 }
  0x58   : > { %v339_v0 = vlaneseq  ;;  %v4540_v4 = vld [vmem:[%s4520_s12 + $0x18] sm:$0xff]  ;;  %v4550_v8 = vld [vmem:[%s4520_s12 + $0x8] sm:$0xff]  ;;  %v3504_v28 = vld [vmem:[%s4520_s12 + $0x20] sm:$0xff]  ;;  %vm622_vm0 = vcmask 195584   ;;  %v4324_v62 = vmov 0.0   ;;  %s3372_s25 = sshll.u32 %s4516_s13, 3 }
  0x59   : > { %4298 = vsyncadd (%p5237_p7), [#allocation6], 4294964608  ;;  %v1499_v9 = vld [vmem:[#allocation5 + $0x48] sm:$0xff]  ;;  %v1500_v10 = vld [vmem:[#allocation5 + $0x50] sm:$0xff]  ;;  %s3610_s10 = sshll.u32 %s4394_s9, 7  ;;  %s337_s29 = scalar_lea.vmem [#allocation7], %s3372_s25 }
  0x5a   : > { %v4531_v1 = vshrl.u32 %v339_v0, 7  ;;  %v619_v11 = vld [vmem:[#allocation5 + $0x18] sm:$0xff]  ;;  %v620_v12 = vld [vmem:[#allocation5 + $0x20] sm:$0xff]  ;;  %v4556_v15 = vpack.c.bf16 %v1500_v10, %v1499_v9  ;;  %v621_v19 = vld [vmem:[#allocation5 + $0x28] sm:$0xff]  ;;  %v4633_v59 = vand.u32 127, %v339_v0  ;;  %s3285_s20 = sshll.u32 %s337_s29, 4  ;;  %s5160_s16 = scalar_lea.hbm %s5213_s8, %s3610_s10  ;;  %s5162_s20 = int_to_ptr.vmem [resolvable:$true] %s3285_s20 }
  0x5b   : > { %v3982_v16 = vpack.c.bf16 %v620_v12, %v619_v11  ;;  %v1501_v18 = vld [vmem:[#allocation5 + $0x58] sm:$0xff]  ;;  %v1850_v23 = vld [vmem:[#allocation5 + $0x60] sm:$0xff]  ;;  %v1851_v24 = vld [vmem:[#allocation5 + $0x68] sm:$0xff]  ;;  %s3272_s9 = scalar_lea.sflag [#allocation4], %s4516_s13  ;;  %s4247_s19 = scalar_lea.vmem %s5162_s20, 128 }
  0x5c   : > { %v4534_v2 = vsub.s32 1, %v4531_v1  ;;  %v4537_v3 = vsub.s32 0, %v4531_v1  ;;  %v4547_v7 = vsub.s32 2, %v4531_v1  ;;  %v4559_v17 = vsub.s32 3, %v4531_v1  ;;  %3995 = vmatprep.subr.bf16.mxu0 %v4556_v15  ;;  %v477_v40 = vld [vmem:[#allocation5] sm:$0xff]  ;;  %v478_v41 = vld [vmem:[#allocation5 + $0x8] sm:$0xff]  ;;  %p4248_p8 = scmp.ne.s32.totalorder %s5162_s20, %s4247_s19 }
  0x5d   : > { %3983 = vmatprep.subr.bf16.mxu1 %v3982_v16  ;;  %3997 = vmatpush3.bf16.msra.mxu0 %v4556_v15  ;;  %v4568_v22 = vsub.s32 4, %v4531_v1  ;;  %v4570_v25 = vpack.c.bf16 %v1851_v24, %v1850_v23  ;;  %v4585_v33 = vsub.s32 5, %v4531_v1  ;;  %v4591_v36 = vsub.s32 6, %v4531_v1  ;;  %v4606_v45 = vld [vmem:[%s4520_s12] sm:$0xff]  ;;  %v4618_v52 = vld [vmem:[%s4520_s12 + $0x28] sm:$0xff]  ;;  %v2202_v12 = vld [vmem:[#allocation5 + $0x80] sm:$0xff] }
  0x5e   : > { %v1376_v5 = vrot.slane %v4540_v4, %v4534_v2  ;;  %v1365_v6 = vrot.slane %v4540_v4, %v4537_v3  ;;  %v1387_v13 = vrot.slane %v4540_v4, %v4547_v7  ;;  %v485_v14 = vrot.slane %v4550_v8, %v4537_v3  ;;  %3985 = vmatpush3.bf16.msra.mxu1 %v3982_v16  ;;  %v1852_v10 = vld [vmem:[#allocation5 + $0x70] sm:$0xff]  ;;  %v2201_v11 = vld [vmem:[#allocation5 + $0x78] sm:$0xff]  ;;  %p5238_p9 = scmp.ne.s32.totalorder %s5225_s17, 0  ;;  %s4327_s14 = smov [#allocation7]  }
  0x5f   : > { %3848 = vmatprep.subr.mxu0 %v1501_v18  ;;  %3758 = vmatprep.subr.mxu1 %v621_v19  ;;  %v1398_v20 = vrot.slane %v4540_v4, %v4559_v17  ;;  %v496_v21 = vrot.slane %v4550_v8, %v4534_v2  ;;  %v1409_v26 = vrot.slane %v4540_v4, %v4568_v22  ;;  %v4597_v39 = vsub.s32 7, %v4531_v1  ;;  %s4251_s22 = sshll.u32 %s4327_s14, 4  ;;  %s4252_s22 = int_to_ptr.vmem [resolvable:$false] %s4251_s22 }
  0x60   : > { %1378 = vbcast.lane.b32.xlu1 %v1376_v5, 256  ;;  %1367 = vbcast.lane.b32.xlu0 %v1365_v6, 256  ;;  %v507_v27 = vrot.slane %v4550_v8, %v4547_v7  ;;  %v1716_v29 = vrot.slane %v3504_v28, %v4537_v3  ;;  %v518_v30 = vrot.slane %v4550_v8, %v4559_v17  ;;  %p4249_p10 = pnand %p4248_p8, %p5238_p9  ;;  %s4253_s15 = scalar_lea.vmem %s4252_s22, 256 }
  0x61   : > { %3849 = vmatpush3.msra.mxu0 %v1501_v18  ;;  %v1727_v31 = vrot.slane %v3504_v28, %v4534_v2  ;;  %v529_v32 = vrot.slane %v4550_v8, %v4568_v22  ;;  %v1738_v34 = vrot.slane %v3504_v28, %v4547_v7  ;;  %v540_v35 = vrot.slane %v4550_v8, %v4585_v33  ;;  %p4254_p4 = scmp.lt.s32.totalorder %s5162_s20, %s4252_s22  ;;  %p4255_p0 = scmp.lt.s32.totalorder %s4253_s15, %s4247_s19 }
  0x62   : > { %3759 = vmatpush3.msra.mxu1 %v621_v19  ;;  %3999 = vmatprep.subr.bf16.mxu0 %v4570_v25  ;;  %v1749_v37 = vrot.slane %v3504_v28, %v4559_v17  ;;  %v551_v38 = vrot.slane %v4550_v8, %v4591_v36  ;;  %v4599_v42 = vpack.c.bf16 %v478_v41, %v477_v40  ;;  %p4250_p1 = pneg %p4249_p10 }
  0x63   : > { %v1760_v43 = vrot.slane %v3504_v28, %v4568_v22  ;;  %v562_v44 = vrot.slane %v4550_v8, %v4597_v39  ;;  %v1771_v46 = vrot.slane %v3504_v28, %v4585_v33  ;;  %v344_v47 = vrot.slane %v4606_v45, %v4537_v3  ;;  %p4256_p5 = por %p4255_p0, %p4254_p4 }
  0x64   : > { %1382 = vbcast.lane.b32.xlu1 %v1376_v5, 264  ;;  %1371 = vbcast.lane.b32.xlu0 %v1365_v6, 264  ;;  %v1782_v48 = vrot.slane %v3504_v28, %v4591_v36  ;;  %v355_v49 = vrot.slane %v4606_v45, %v4534_v2  ;;  %v1793_v50 = vrot.slane %v3504_v28, %v4597_v39 }
  0x65   : > { %3987 = vmatprep.subr.bf16.mxu1 %v4599_v42  ;;  %v366_v51 = vrot.slane %v4606_v45, %v4547_v7  ;;  %v2067_v53 = vrot.slane %v4618_v52, %v4537_v3  ;;  %v377_v54 = vrot.slane %v4606_v45, %v4559_v17  ;;  %v2078_v55 = vrot.slane %v4618_v52, %v4534_v2  ;;  %p4257_p11 = pnand %p4256_p5, %p4250_p1 }
  0x66   : > { %v388_v56 = vrot.slane %v4606_v45, %v4568_v22  ;;  %v2089_v57 = vrot.slane %v4618_v52, %v4547_v7  ;;  %v399_v58 = vrot.slane %v4606_v45, %v4585_v33  ;;  %v2100_v5 = vrot.slane %v4618_v52, %v4559_v17 }
  0x67   : > { %v410_v6 = vrot.slane %v4606_v45, %v4591_v36  ;;  %v2111_v18 = vrot.slane %v4618_v52, %v4568_v22  ;;  %v4654_v19 = vpack.c.bf16 %v2202_v12, %v2201_v11  ;;  %v421_v24 = vrot.slane %v4606_v45, %v4597_v39  ;;  %v2553_v12 = vld [vmem:[#allocation5 + $0x98] sm:$0xff] }
  0x68   : > { %1389 = vbcast.lane.b32.xlu1 %v1387_v13, 256  ;;  %487 = vbcast.lane.b32.xlu0 %v485_v14, 256  ;;  %v2122_v41 = vrot.slane %v4618_v52, %v4585_v33 }
  0x6c   : > { %1393 = vbcast.lane.b32.xlu1 %v1387_v13, 264  ;;  %491 = vbcast.lane.b32.xlu0 %v485_v14, 264 }
  0x70   : > { %1400 = vbcast.lane.b32.xlu1 %v1398_v20, 256  ;;  %498 = vbcast.lane.b32.xlu0 %v496_v21, 256 }
  0x74   : > { %1404 = vbcast.lane.b32.xlu1 %v1398_v20, 264  ;;  %502 = vbcast.lane.b32.xlu0 %v496_v21, 264 }
  0x78   : > { %1411 = vbcast.lane.b32.xlu1 %v1409_v26, 256  ;;  %509 = vbcast.lane.b32.xlu0 %v507_v27, 256 }
  0x7c   : > { %1415 = vbcast.lane.b32.xlu1 %v1409_v26, 264  ;;  %513 = vbcast.lane.b32.xlu0 %v507_v27, 264  ;;  %v479_v27 = vld [vmem:[#allocation5 + $0x10] sm:$0xff] }
  0x80   : > { %1718 = vbcast.lane.b32.xlu1 %v1716_v29, 256  ;;  %520 = vbcast.lane.b32.xlu0 %v518_v30, 256 }
  0x84   : > { %1722 = vbcast.lane.b32.xlu1 %v1716_v29, 264  ;;  %524 = vbcast.lane.b32.xlu0 %v518_v30, 264  ;;  %v1148_v30 = vld [vmem:[#allocation5 + $0x30] sm:$0xff] }
  0x88   : > { %1729 = vbcast.lane.b32.xlu1 %v1727_v31, 256  ;;  %531 = vbcast.lane.b32.xlu0 %v529_v32, 256 }
  0x8c   : > { %1733 = vbcast.lane.b32.xlu1 %v1727_v31, 264  ;;  %535 = vbcast.lane.b32.xlu0 %v529_v32, 264  ;;  %v1149_v31 = vld [vmem:[#allocation5 + $0x38] sm:$0xff] }
  0x8d   : > { %v4672_v32 = vld [vmem:[%s4520_s12 + $0x10] sm:$0xff] }
  0x90   : > { %1740 = vbcast.lane.b32.xlu1 %v1738_v34, 256  ;;  %542 = vbcast.lane.b32.xlu0 %v540_v35, 256 }
  0x94   : > { %1744 = vbcast.lane.b32.xlu1 %v1738_v34, 264  ;;  %546 = vbcast.lane.b32.xlu0 %v540_v35, 264 }
  0x98   : > { %1751 = vbcast.lane.b32.xlu1 %v1749_v37, 256  ;;  %553 = vbcast.lane.b32.xlu0 %v551_v38, 256 }
  0x9c   : > { %1755 = vbcast.lane.b32.xlu1 %v1749_v37, 264  ;;  %557 = vbcast.lane.b32.xlu0 %v551_v38, 264  ;;  %v4677_v37 = vpack.c.bf16 %v1149_v31, %v1148_v30 }
  0xa0   : > { %1762 = vbcast.lane.b32.xlu1 %v1760_v43, 256  ;;  %564 = vbcast.lane.b32.xlu0 %v562_v44, 256 }
  0xa4   : > { %1766 = vbcast.lane.b32.xlu1 %v1760_v43, 264  ;;  %568 = vbcast.lane.b32.xlu0 %v562_v44, 264  ;;  %v1014_v43 = vrot.slane %v4672_v32, %v4537_v3 }
  0xa8   : > { %1773 = vbcast.lane.b32.xlu1 %v1771_v46, 256  ;;  %346 = vbcast.lane.b32.xlu0 %v344_v47, 256 }
  0xac   : > { %1777 = vbcast.lane.b32.xlu1 %v1771_v46, 264  ;;  %350 = vbcast.lane.b32.xlu0 %v344_v47, 264 }
  0xb0   : > { %1784 = vbcast.lane.b32.xlu1 %v1782_v48, 256  ;;  %357 = vbcast.lane.b32.xlu0 %v355_v49, 256 }
  0xb4   : > { %1788 = vbcast.lane.b32.xlu1 %v1782_v48, 264  ;;  %361 = vbcast.lane.b32.xlu0 %v355_v49, 264 }
  0xb8   : > { %1795 = vbcast.lane.b32.xlu1 %v1793_v50, 256  ;;  %368 = vbcast.lane.b32.xlu0 %v366_v51, 256 }
  0xbc   : > { %1799 = vbcast.lane.b32.xlu1 %v1793_v50, 264  ;;  %372 = vbcast.lane.b32.xlu0 %v366_v51, 264  ;;  %v2133_v51 = vrot.slane %v4618_v52, %v4591_v36 }
  0xc0   : > { %2069 = vbcast.lane.b32.xlu1 %v2067_v53, 256  ;;  %379 = vbcast.lane.b32.xlu0 %v377_v54, 256 }
  0xc4   : > { %2073 = vbcast.lane.b32.xlu1 %v2067_v53, 264  ;;  %383 = vbcast.lane.b32.xlu0 %v377_v54, 264  ;;  %v1025_v53 = vrot.slane %v4672_v32, %v4534_v2 }
  0xc8   : > { %2080 = vbcast.lane.b32.xlu1 %v2078_v55, 256  ;;  %390 = vbcast.lane.b32.xlu0 %v388_v56, 256 }
  0xcc   : > { %2084 = vbcast.lane.b32.xlu1 %v2078_v55, 264  ;;  %394 = vbcast.lane.b32.xlu0 %v388_v56, 264 }
  0xd0   : > { %2091 = vbcast.lane.b32.xlu1 %v2089_v57, 256  ;;  %401 = vbcast.lane.b32.xlu0 %v399_v58, 256 }
  0xd2   : > { %v1379_v60 = vpop.permute.xlu1 %1378  ;;  %v1368_v61 = vpop.permute.xlu0 %1367 }
  0xd3   : > { %vm1450_vm1 = vcmp.eq.s32.totalorder %v4633_v59, %v1368_v61  ;;  %vm1452_vm2 = vcmp.eq.s32.totalorder %v4633_v59, %v1379_v60 }
  0xd4   : > { %2095 = vbcast.lane.b32.xlu1 %v2089_v57, 264  ;;  %405 = vbcast.lane.b32.xlu0 %v399_v58, 264  ;;  %v3472_v63 = vsel %vm1450_vm1, 1.0, %v4324_v62  ;;  %v3474_v13 = vsel %vm1452_vm2, 1.0, %v4324_v62 }
  0xd5   : > { %3850 = vmatprep.mubr.msk.f32.mxu0 %vm622_vm0, %v3472_v63 }
  0xd6   : > { %v1383_v0 = vpop.permute.xlu1 %1382  ;;  %v1372_v8 = vpop.permute.xlu0 %1371 }
  0xd7   : > { %vm1451_vm3 = vcmp.eq.s32.totalorder %v4633_v59, %v1372_v8  ;;  %vm1453_vm4 = vcmp.eq.s32.totalorder %v4633_v59, %v1383_v0 }
  0xd8   : > { %v3473_v9 = vsel %vm1451_vm3, 1.0, %v4324_v62  ;;  %2102 = vbcast.lane.b32.xlu1 %v2100_v5, 256  ;;  %412 = vbcast.lane.b32.xlu0 %v410_v6, 256  ;;  %v3475_v20 = vsel %vm1453_vm4, 1.0, %v4324_v62 }
  0xd9   : > { %3851 = vmatmul.mubr.msk.f32.vlgmr.msra.gmra.mrb[0].mxu0 %vm622_vm0, %v3473_v9  ;;  %v2203_v9 = vld [vmem:[#allocation5 + $0x88] sm:$0xff] }
  0xda   : > { %v1390_v14 = vpop.permute.xlu1 %1389  ;;  %3853 = vmatprep.mubr.msk.f32.mxu0 %vm622_vm0, %v3474_v13  ;;  %v488_v16 = vpop.permute.xlu0 %487  ;;  %4001 = vmatpush3.bf16.msra.mxu0 %v4570_v25  ;;  %v4727_v13 = vld [vmem:[%s4520_s12 + $0x30] sm:$0xff] }
  0xdb   : > { %vm1454_vm5 = vcmp.eq.s32.totalorder %v4633_v59, %v1390_v14  ;;  %vm570_vm6 = vcmp.eq.s32.totalorder %v4633_v59, %v488_v16  ;;  %3878 = vmatprep.subr.mxu0 %v1852_v10 }
  0xdc   : > { %v3476_v21 = vsel %vm1454_vm5, 1.0, %v4324_v62  ;;  %2106 = vbcast.lane.b32.xlu1 %v2100_v5, 264  ;;  %416 = vbcast.lane.b32.xlu0 %v410_v6, 264  ;;  %v3390_v23 = vsel %vm570_vm6, 1.0, %v4324_v62  ;;  %v2144_v5 = vrot.slane %v4618_v52, %v4597_v39  ;;  %v1036_v6 = vrot.slane %v4672_v32, %v4547_v7  ;;  %v2552_v52 = vld [vmem:[#allocation5 + $0x90] sm:$0xff] }
  0xdd   : > { %3760 = vmatprep.mubr.msk.f32.mxu1 %vm622_vm0, %v3390_v23  ;;  %3854 = vmatmul.mubr.msk.f32.gmra.mrb[2].mxu0 %vm622_vm0, %v3475_v20  ;;  %v2418_v23 = vrot.slane %v4727_v13, %v4537_v3 }
  0xde   : > { %v1394_v25 = vpop.permute.xlu1 %1393  ;;  %3856 = vmatprep.mubr.msk.f32.mxu0 %vm622_vm0, %v3476_v21  ;;  %v492_v26 = vpop.permute.xlu0 %491  ;;  %3879 = vmatpush3.msra.mxu0 %v1852_v10 }
  0xdf   : > { %vm1455_vm7 = vcmp.eq.s32.totalorder %v4633_v59, %v1394_v25  ;;  %vm571_vm8 = vcmp.eq.s32.totalorder %v4633_v59, %v492_v26  ;;  %4003 = vmatprep.subr.bf16.mxu0 %v4654_v19 }
  0xe0   : > { %v3477_v28 = vsel %vm1455_vm7, 1.0, %v4324_v62  ;;  %v3391_v29 = vsel %vm571_vm8, 1.0, %v4324_v62  ;;  %2113 = vbcast.lane.b32.xlu1 %v2111_v18, 256  ;;  %423 = vbcast.lane.b32.xlu0 %v421_v24, 256 }
  0xe1   : > { %3761 = vmatmul.mubr.msk.f32.vlgmr.msra.gmra.mrb[0].mxu1 %vm622_vm0, %v3391_v29  ;;  %3857 = vmatmul.mubr.msk.f32.gmra.mrb[4].mxu0 %vm622_vm0, %v3477_v28 }
  0xe2   : > { %v1401_v34 = vpop.permute.xlu1 %1400  ;;  %v499_v35 = vpop.permute.xlu0 %498  ;;  %3989 = vmatpush3.bf16.msra.mxu1 %v4599_v42 }
  0xe3   : > { %vm1456_vm9 = vcmp.eq.s32.totalorder %v4633_v59, %v1401_v34  ;;  %vm572_vm10 = vcmp.eq.s32.totalorder %v4633_v59, %v499_v35  ;;  %3788 = vmatprep.subr.mxu1 %v479_v27  ;;  %v2429_v34 = vrot.slane %v4727_v13, %v4534_v2  ;;  %v1058_v35 = vrot.slane %v4672_v32, %v4568_v22 }
  0xe4   : > { %v3478_v38 = vsel %vm1456_vm9, 1.0, %v4324_v62  ;;  %v3392_v40 = vsel %vm572_vm10, 1.0, %v4324_v62  ;;  %2117 = vbcast.lane.b32.xlu1 %v2111_v18, 264  ;;  %427 = vbcast.lane.b32.xlu0 %v421_v24, 264  ;;  %v4732_v18 = vpack.c.bf16 %v2553_v12, %v2552_v52  ;;  %v1047_v24 = vrot.slane %v4672_v32, %v4559_v17 }
  0xe5   : > { %3763 = vmatprep.mubr.msk.f32.mxu1 %vm622_vm0, %v3392_v40  ;;  %3859 = vmatprep.mubr.msk.f32.mxu0 %vm622_vm0, %v3478_v38  ;;  %v1091_v52 = vrot.slane %v4672_v32, %v4597_v39 }
  0xe6   : > { %v1405_v42 = vpop.permute.xlu1 %1404  ;;  %v503_v44 = vpop.permute.xlu0 %502  ;;  %3789 = vmatpush3.msra.mxu1 %v479_v27 }
  0xe7   : > { %vm1457_vm11 = vcmp.eq.s32.totalorder %v4633_v59, %v1405_v42  ;;  %vm573_vm12 = vcmp.eq.s32.totalorder %v4633_v59, %v503_v44  ;;  %3991 = vmatprep.subr.bf16.mxu1 %v4677_v37 }
  0xe8   : > { %v3479_v45 = vsel %vm1457_vm11, 1.0, %v4324_v62  ;;  %v3393_v46 = vsel %vm573_vm12, 1.0, %v4324_v62  ;;  %2124 = vbcast.lane.b32.xlu1 %v2122_v41, 256  ;;  %1016 = vbcast.lane.b32.xlu0 %v1014_v43, 256 }
  0xe9   : > { %3764 = vmatmul.mubr.msk.f32.gmra.mrb[2].mxu1 %vm622_vm0, %v3393_v46  ;;  %3860 = vmatmul.mubr.msk.f32.gmra.mrb[6].mxu0 %vm622_vm0, %v3479_v45 }
  0xea   : > { %v1412_v47 = vpop.permute.xlu1 %1411  ;;  %v510_v48 = vpop.permute.xlu0 %509 }
  0xeb   : > { %vm1458_vm13 = vcmp.eq.s32.totalorder %v4633_v59, %v1412_v47  ;;  %vm574_vm14 = vcmp.eq.s32.totalorder %v4633_v59, %v510_v48  ;;  %v2440_v47 = vrot.slane %v4727_v13, %v4547_v7  ;;  %v1069_v48 = vrot.slane %v4672_v32, %v4585_v33 }
  0xec   : > { %v3480_v49 = vsel %vm1458_vm13, 1.0, %v4324_v62  ;;  %v3394_v50 = vsel %vm574_vm14, 1.0, %v4324_v62  ;;  %2128 = vbcast.lane.b32.xlu1 %v2122_v41, 264  ;;  %1020 = vbcast.lane.b32.xlu0 %v1014_v43, 264 }
  0xed   : > { %3766 = vmatprep.mubr.msk.f32.mxu1 %vm622_vm0, %v3394_v50  ;;  %3862 = vmatprep.mubr.msk.f32.mxu0 %vm622_vm0, %v3480_v49 }
  0xee   : > { %v1416_v54 = vpop.permute.xlu1 %1415  ;;  %v514_v55 = vpop.permute.xlu0 %513 }
  0xef   : > { %vm1459_vm15 = vcmp.eq.s32.totalorder %v4633_v59, %v1416_v54  ;;  %vm575_vm1 = vcmp.eq.s32.totalorder %v4633_v59, %v514_v55 }
  0xf0   : > { %v3481_v56 = vsel %vm1459_vm15, 1.0, %v4324_v62  ;;  %v3395_v57 = vsel %vm575_vm1, 1.0, %v4324_v62  ;;  %2135 = vbcast.lane.b32.xlu1 %v2133_v51, 256  ;;  %1027 = vbcast.lane.b32.xlu0 %v1025_v53, 256 }
  0xf1   : > { %3767 = vmatmul.mubr.msk.f32.gmra.mrb[4].mxu1 %vm622_vm0, %v3395_v57  ;;  %3863 = vmatmul.mubr.msk.f32.gmra.mrb[8].mxu0 %vm622_vm0, %v3481_v56 }
  0xf2   : > { %v1719_v58 = vpop.permute.xlu1 %1718  ;;  %v521_v60 = vpop.permute.xlu0 %520 }
  0xf3   : > { %vm1801_vm2 = vcmp.eq.s32.totalorder %v4633_v59, %v1719_v58  ;;  %vm576_vm3 = vcmp.eq.s32.totalorder %v4633_v59, %v521_v60  ;;  %v2451_v58 = vrot.slane %v4727_v13, %v4559_v17  ;;  %v1080_v60 = vrot.slane %v4672_v32, %v4591_v36 }
  0xf4   : > { %v3505_v61 = vsel %vm1801_vm2, 1.0, %v4324_v62  ;;  %v3396_v63 = vsel %vm576_vm3, 1.0, %v4324_v62  ;;  %2139 = vbcast.lane.b32.xlu1 %v2133_v51, 264  ;;  %1031 = vbcast.lane.b32.xlu0 %v1025_v53, 264 }
  0xf5   : > { %3769 = vmatprep.mubr.msk.f32.mxu1 %vm622_vm0, %v3396_v63  ;;  %3880 = vmatprep.mubr.msk.f32.mxu0 %vm622_vm0, %v3505_v61 }
  0xf6   : > { %v1723_v0 = vpop.permute.xlu1 %1722  ;;  %v525_v8 = vpop.permute.xlu0 %524 }
  0xf7   : > { %vm1802_vm4 = vcmp.eq.s32.totalorder %v4633_v59, %v1723_v0  ;;  %vm577_vm5 = vcmp.eq.s32.totalorder %v4633_v59, %v525_v8 }
  0xf8   : > { %v3506_v10 = vsel %vm1802_vm4, 1.0, %v4324_v62  ;;  %v3397_v11 = vsel %vm577_vm5, 1.0, %v4324_v62  ;;  %2146 = vbcast.lane.b32.xlu1 %v2144_v5, 256  ;;  %1038 = vbcast.lane.b32.xlu0 %v1036_v6, 256 }
  0xf9   : > { %3770 = vmatmul.mubr.msk.f32.gmra.mrb[6].mxu1 %vm622_vm0, %v3397_v11  ;;  %3881 = vmatmul.mubr.msk.f32.vlgmr.msra.gmra.mrb[0].mxu0 %vm622_vm0, %v3506_v10  ;;  %v2462_v11 = vrot.slane %v4727_v13, %v4568_v22 }
  0xfa   : > { %v1730_v14 = vpop.permute.xlu1 %1729  ;;  %v532_v16 = vpop.permute.xlu0 %531  ;;  %4005 = vmatpush3.bf16.msra.mxu0 %v4654_v19 }
  0xfb   : > { %vm1803_vm6 = vcmp.eq.s32.totalorder %v4633_v59, %v1730_v14  ;;  %vm578_vm7 = vcmp.eq.s32.totalorder %v4633_v59, %v532_v16  ;;  %3908 = vmatprep.subr.mxu0 %v2203_v9 }
  0xfc   : > { %v3507_v20 = vsel %vm1803_vm6, 1.0, %v4324_v62  ;;  %v3398_v21 = vsel %vm578_vm7, 1.0, %v4324_v62  ;;  %2150 = vbcast.lane.b32.xlu1 %v2144_v5, 264  ;;  %1042 = vbcast.lane.b32.xlu0 %v1036_v6, 264 }
  0xfd   : > { %3772 = vmatprep.mubr.msk.f32.mxu1 %vm622_vm0, %v3398_v21  ;;  %3883 = vmatprep.mubr.msk.f32.mxu0 %vm622_vm0, %v3507_v20  ;;  %v1150_v21 = vld [vmem:[#allocation5 + $0x40] sm:$0xff] }
  0xfe   : > { %v1734_v19 = vpop.permute.xlu1 %1733  ;;  %v536_v25 = vpop.permute.xlu0 %535  ;;  %3909 = vmatpush3.msra.mxu0 %v2203_v9 }
  0xff   : > { %vm1804_vm8 = vcmp.eq.s32.totalorder %v4633_v59, %v1734_v19  ;;  %vm579_vm9 = vcmp.eq.s32.totalorder %v4633_v59, %v536_v25  ;;  %4007 = vmatprep.subr.bf16.mxu0 %v4732_v18  ;;  %v2473_v25 = vrot.slane %v4727_v13, %v4585_v33 }
 0x100   : > { %v3508_v26 = vsel %vm1804_vm8, 1.0, %v4324_v62  ;;  %v3399_v27 = vsel %vm579_vm9, 1.0, %v4324_v62  ;;  %2420 = vbcast.lane.b32.xlu1 %v2418_v23, 256  ;;  %1049 = vbcast.lane.b32.xlu0 %v1047_v24, 256 }
 0x101   : > { %3773 = vmatmul.mubr.msk.f32.gmra.mrb[8].mxu1 %vm622_vm0, %v3399_v27  ;;  %3884 = vmatmul.mubr.msk.f32.gmra.mrb[2].mxu0 %vm622_vm0, %v3508_v26  ;;  %v1420_v26 = vrot.slane %v4540_v4, %v4585_v33 }
 0x102   : > { %v1741_v28 = vpop.permute.xlu1 %1740  ;;  %v543_v29 = vpop.permute.xlu0 %542 }
 0x103   : > { %vm1805_vm10 = vcmp.eq.s32.totalorder %v4633_v59, %v1741_v28  ;;  %vm580_vm11 = vcmp.eq.s32.totalorder %v4633_v59, %v543_v29 }
 0x104   : > { %v3509_v30 = vsel %vm1805_vm10, 1.0, %v4324_v62  ;;  %v3400_v31 = vsel %vm580_vm11, 1.0, %v4324_v62  ;;  %2424 = vbcast.lane.b32.xlu1 %v2418_v23, 264  ;;  %1053 = vbcast.lane.b32.xlu0 %v1047_v24, 264 }
 0x105   : > { %3775 = vmatprep.mubr.msk.f32.mxu1 %vm622_vm0, %v3400_v31  ;;  %3886 = vmatprep.mubr.msk.f32.mxu0 %vm622_vm0, %v3509_v30 }
 0x106   : > { %v1745_v38 = vpop.permute.xlu1 %1744  ;;  %v547_v40 = vpop.permute.xlu0 %546 }
 0x107   : > { %vm1806_vm12 = vcmp.eq.s32.totalorder %v4633_v59, %v1745_v38  ;;  %vm581_vm13 = vcmp.eq.s32.totalorder %v4633_v59, %v547_v40  ;;  %v2484_v38 = vrot.slane %v4727_v13, %v4591_v36  ;;  %v1431_v40 = vrot.slane %v4540_v4, %v4591_v36 }
 0x108   : > { %v3510_v41 = vsel %vm1806_vm12, 1.0, %v4324_v62  ;;  %v3401_v43 = vsel %vm581_vm13, 1.0, %v4324_v62  ;;  %2431 = vbcast.lane.b32.xlu1 %v2429_v34, 256  ;;  %1060 = vbcast.lane.b32.xlu0 %v1058_v35, 256 }
 0x109   : > { %3776 = vmatmul.mubr.msk.f32.gmra.mrb[10].mxu1 %vm622_vm0, %v3401_v43  ;;  %3887 = vmatmul.mubr.msk.f32.gmra.mrb[4].mxu0 %vm622_vm0, %v3510_v41 }
 0x10a   : > { %v1752_v42 = vpop.permute.xlu1 %1751  ;;  %v554_v44 = vpop.permute.xlu0 %553 }
 0x10b   : > { %vm1807_vm14 = vcmp.eq.s32.totalorder %v4633_v59, %v1752_v42  ;;  %vm582_vm15 = vcmp.eq.s32.totalorder %v4633_v59, %v554_v44 }
 0x10c   : > { %v3511_v45 = vsel %vm1807_vm14, 1.0, %v4324_v62  ;;  %v3402_v46 = vsel %vm582_vm15, 1.0, %v4324_v62  ;;  %2435 = vbcast.lane.b32.xlu1 %v2429_v34, 264  ;;  %1064 = vbcast.lane.b32.xlu0 %v1058_v35, 264 }
 0x10d   : > { %3778 = vmatprep.mubr.msk.f32.mxu1 %vm622_vm0, %v3402_v46  ;;  %3889 = vmatprep.mubr.msk.f32.mxu0 %vm622_vm0, %v3511_v45 }
 0x10e   : > { %v1756_v49 = vpop.permute.xlu1 %1755  ;;  %v558_v50 = vpop.permute.xlu0 %557 }
 0x10f   : > { %vm1808_vm1 = vcmp.eq.s32.totalorder %v4633_v59, %v1756_v49  ;;  %vm583_vm2 = vcmp.eq.s32.totalorder %v4633_v59, %v558_v50  ;;  %v2495_v49 = vrot.slane %v4727_v13, %v4597_v39  ;;  %v1442_v50 = vrot.slane %v4540_v4, %v4597_v39  ;;  %v2554_v13 = vld [vmem:[#allocation5 + $0xa0] sm:$0xff] }
 0x110   : > { %v3512_v51 = vsel %vm1808_vm1, 1.0, %v4324_v62  ;;  %v3403_v53 = vsel %vm583_vm2, 1.0, %v4324_v62  ;;  %2442 = vbcast.lane.b32.xlu1 %v2440_v47, 256  ;;  %1071 = vbcast.lane.b32.xlu0 %v1069_v48, 256 }
 0x111   : > { %3779 = vmatmul.mubr.msk.f32.gmra.mrb[12].mxu1 %vm622_vm0, %v3403_v53  ;;  %3890 = vmatmul.mubr.msk.f32.gmra.mrb[6].mxu0 %vm622_vm0, %v3512_v51 }
 0x112   : > { %v1763_v54 = vpop.permute.xlu1 %1762  ;;  %v565_v55 = vpop.permute.xlu0 %564 }
 0x113   : > { %vm1809_vm3 = vcmp.eq.s32.totalorder %v4633_v59, %v1763_v54  ;;  %vm584_vm4 = vcmp.eq.s32.totalorder %v4633_v59, %v565_v55 }
 0x114   : > { %v3513_v56 = vsel %vm1809_vm3, 1.0, %v4324_v62  ;;  %v3404_v57 = vsel %vm584_vm4, 1.0, %v4324_v62  ;;  %2446 = vbcast.lane.b32.xlu1 %v2440_v47, 264  ;;  %1075 = vbcast.lane.b32.xlu0 %v1069_v48, 264 }
 0x115   : > { %3781 = vmatprep.mubr.msk.f32.mxu1 %vm622_vm0, %v3404_v57  ;;  %3892 = vmatprep.mubr.msk.f32.mxu0 %vm622_vm0, %v3513_v56 }
 0x116   : > { %v1767_v61 = vpop.permute.xlu1 %1766  ;;  %v569_v63 = vpop.permute.xlu0 %568 }
 0x117   : > { %vm1810_vm5 = vcmp.eq.s32.totalorder %v4633_v59, %v1767_v61  ;;  %vm585_vm6 = vcmp.eq.s32.totalorder %v4633_v59, %v569_v63 }
 0x118   : > { %v3514_v5 = vsel %vm1810_vm5, 1.0, %v4324_v62  ;;  %v3405_v6 = vsel %vm585_vm6, 1.0, %v4324_v62  ;;  %2453 = vbcast.lane.b32.xlu1 %v2451_v58, 256  ;;  %1082 = vbcast.lane.b32.xlu0 %v1080_v60, 256 }
 0x119   : > { %3782 = vmatmul.mubr.msk.f32.gmra.mrb[14].mxu1 %vm622_vm0, %v3405_v6  ;;  %3893 = vmatmul.mubr.msk.f32.gmra.mrb[8].mxu0 %vm622_vm0, %v3514_v5 }
 0x11a   : > { %v1774_v0 = vpop.permute.xlu1 %1773  ;;  %v347_v8 = vpop.permute.xlu0 %346 }
 0x11b   : > { %vm1811_vm7 = vcmp.eq.s32.totalorder %v4633_v59, %v1774_v0  ;;  %vm429_vm8 = vcmp.eq.s32.totalorder %v4633_v59, %v347_v8 }
 0x11c   : > { %v3515_v9 = vsel %vm1811_vm7, 1.0, %v4324_v62  ;;  %v3373_v10 = vsel %vm429_vm8, 1.0, %v4324_v62  ;;  %2457 = vbcast.lane.b32.xlu1 %v2451_v58, 264  ;;  %1086 = vbcast.lane.b32.xlu0 %v1080_v60, 264 }
 0x11d   : > { %3790 = vmatprep.mubr.msk.f32.mxu1 %vm622_vm0, %v3373_v10  ;;  %3895 = vmatprep.mubr.msk.f32.mxu0 %vm622_vm0, %v3515_v9 }
 0x11e   : > { %v1778_v12 = vpop.permute.xlu1 %1777  ;;  %v351_v14 = vpop.permute.xlu0 %350 }
 0x11f   : > { %vm1812_vm9 = vcmp.eq.s32.totalorder %v4633_v59, %v1778_v12  ;;  %vm430_vm10 = vcmp.eq.s32.totalorder %v4633_v59, %v351_v14 }
 0x120   : > { %v3516_v16 = vsel %vm1812_vm9, 1.0, %v4324_v62  ;;  %v3374_v20 = vsel %vm430_vm10, 1.0, %v4324_v62  ;;  %2464 = vbcast.lane.b32.xlu1 %v2462_v11, 256  ;;  %1093 = vbcast.lane.b32.xlu0 %v1091_v52, 256 }
 0x121   : > { %3791 = vmatmul.mubr.msk.f32.vlgmr.msra.gmra.mrb[0].mxu1 %vm622_vm0, %v3374_v20  ;;  %3896 = vmatmul.mubr.msk.f32.gmra.mrb[10].mxu0 %vm622_vm0, %v3516_v16 }
 0x122   : > { %v1785_v32 = vpop.permute.xlu1 %1784  ;;  %v358_v23 = vpop.permute.xlu0 %357  ;;  %3993 = vmatpush3.bf16.msra.mxu1 %v4677_v37 }
 0x123   : > { %vm1813_vm11 = vcmp.eq.s32.totalorder %v4633_v59, %v1785_v32  ;;  %vm431_vm12 = vcmp.eq.s32.totalorder %v4633_v59, %v358_v23  ;;  %3818 = vmatprep.subr.mxu1 %v1150_v21 }
 0x124   : > { %v3517_v24 = vsel %vm1813_vm11, 1.0, %v4324_v62  ;;  %v3375_v19 = vsel %vm431_vm12, 1.0, %v4324_v62  ;;  %2468 = vbcast.lane.b32.xlu1 %v2462_v11, 264  ;;  %1097 = vbcast.lane.b32.xlu0 %v1091_v52, 264 }
 0x125   : > { %3793 = vmatprep.mubr.msk.f32.mxu1 %vm622_vm0, %v3375_v19  ;;  %3898 = vmatprep.mubr.msk.f32.mxu0 %vm622_vm0, %v3517_v24 }
 0x126   : > { %v1789_v37 = vpop.permute.xlu1 %1788  ;;  %v362_v27 = vpop.permute.xlu0 %361  ;;  %3819 = vmatpush3.msra.mxu1 %v1150_v21 }
 0x127   : > { %vm1814_vm13 = vcmp.eq.s32.totalorder %v4633_v59, %v1789_v37  ;;  %vm432_vm14 = vcmp.eq.s32.totalorder %v4633_v59, %v362_v27  ;;  %4019 = vmatprep.subr.bf16.mxu1 %v4556_v15 }
 0x128   : > { %v3518_v28 = vsel %vm1814_vm13, 1.0, %v4324_v62  ;;  %v3376_v29 = vsel %vm432_vm14, 1.0, %v4324_v62  ;;  %2475 = vbcast.lane.b32.xlu1 %v2473_v25, 256  ;;  %1422 = vbcast.lane.b32.xlu0 %v1420_v26, 256 }
 0x129   : > { %3794 = vmatmul.mubr.msk.f32.gmra.mrb[2].mxu1 %vm622_vm0, %v3376_v29  ;;  %3899 = vmatmul.mubr.msk.f32.gmra.mrb[12].mxu0 %vm622_vm0, %v3518_v28 }
 0x12a   : > { %v1796_v30 = vpop.permute.xlu1 %1795  ;;  %v369_v31 = vpop.permute.xlu0 %368 }
 0x12b   : > { %vm1815_vm15 = vcmp.eq.s32.totalorder %v4633_v59, %v1796_v30  ;;  %vm433_vm1 = vcmp.eq.s32.totalorder %v4633_v59, %v369_v31 }
 0x12c   : > { %v3519_v34 = vsel %vm1815_vm15, 1.0, %v4324_v62  ;;  %v3377_v35 = vsel %vm433_vm1, 1.0, %v4324_v62  ;;  %2479 = vbcast.lane.b32.xlu1 %v2473_v25, 264  ;;  %1426 = vbcast.lane.b32.xlu0 %v1420_v26, 264 }
 0x12d   : > { %3796 = vmatprep.mubr.msk.f32.mxu1 %vm622_vm0, %v3377_v35  ;;  %3901 = vmatprep.mubr.msk.f32.mxu0 %vm622_vm0, %v3519_v34 }
 0x12e   : > { %v1800_v41 = vpop.permute.xlu1 %1799  ;;  %v373_v43 = vpop.permute.xlu0 %372 }
 0x12f   : > { %vm1816_vm2 = vcmp.eq.s32.totalorder %v4633_v59, %v1800_v41  ;;  %vm434_vm3 = vcmp.eq.s32.totalorder %v4633_v59, %v373_v43 }
 0x130   : > { %v3520_v42 = vsel %vm1816_vm2, 1.0, %v4324_v62  ;;  %v3378_v44 = vsel %vm434_vm3, 1.0, %v4324_v62  ;;  %2486 = vbcast.lane.b32.xlu1 %v2484_v38, 256  ;;  %1433 = vbcast.lane.b32.xlu0 %v1431_v40, 256 }
 0x131   : > { %3797 = vmatmul.mubr.msk.f32.gmra.mrb[4].mxu1 %vm622_vm0, %v3378_v44  ;;  %3902 = vmatmul.mubr.msk.f32.gmra.mrb[14].mxu0 %vm622_vm0, %v3520_v42 }
 0x132   : > { %v2070_v45 = vpop.permute.xlu1 %2069  ;;  %v380_v46 = vpop.permute.xlu0 %379 }
 0x133   : > { %vm2152_vm4 = vcmp.eq.s32.totalorder %v4633_v59, %v2070_v45  ;;  %vm435_vm5 = vcmp.eq.s32.totalorder %v4633_v59, %v380_v46  ;;  %v4188_v46 = vld [vmem:[#allocation5 + $0x58] sm:$0xff] }
 0x134   : > { %v3538_v47 = vsel %vm2152_vm4, 1.0, %v4324_v62  ;;  %v3379_v48 = vsel %vm435_vm5, 1.0, %v4324_v62  ;;  %2490 = vbcast.lane.b32.xlu1 %v2484_v38, 264  ;;  %1437 = vbcast.lane.b32.xlu0 %v1431_v40, 264 }
 0x135   : > { %3799 = vmatprep.mubr.msk.f32.mxu1 %vm622_vm0, %v3379_v48  ;;  %3910 = vmatprep.mubr.msk.f32.mxu0 %vm622_vm0, %v3538_v47 }
 0x136   : > { %v2074_v51 = vpop.permute.xlu1 %2073  ;;  %v384_v53 = vpop.permute.xlu0 %383 }
 0x137   : > { %vm2153_vm6 = vcmp.eq.s32.totalorder %v4633_v59, %v2074_v51  ;;  %vm436_vm7 = vcmp.eq.s32.totalorder %v4633_v59, %v384_v53 }
 0x138   : > { %v3539_v54 = vsel %vm2153_vm6, 1.0, %v4324_v62  ;;  %v3380_v55 = vsel %vm436_vm7, 1.0, %v4324_v62  ;;  %2497 = vbcast.lane.b32.xlu1 %v2495_v49, 256  ;;  %1444 = vbcast.lane.b32.xlu0 %v1442_v50, 256 }
 0x139   : > { %3800 = vmatmul.mubr.msk.f32.gmra.mrb[6].mxu1 %vm622_vm0, %v3380_v55  ;;  %3911 = vmatmul.mubr.msk.f32.vlgmr.msra.gmra.mrb[0].mxu0 %vm622_vm0, %v3539_v54 }
 0x13a   : > { %v2081_v4 = vpop.permute.xlu1 %2080  ;;  %v391_v56 = vpop.permute.xlu0 %390  ;;  %4009 = vmatpush3.bf16.msra.mxu0 %v4732_v18 }
 0x13b   : > { %vm2154_vm8 = vcmp.eq.s32.totalorder %v4633_v59, %v2081_v4  ;;  %vm437_vm9 = vcmp.eq.s32.totalorder %v4633_v59, %v391_v56  ;;  %3938 = vmatprep.subr.mxu0 %v2554_v13 }
 0x13c   : > { %v3540_v57 = vsel %vm2154_vm8, 1.0, %v4324_v62  ;;  %v3381_v58 = vsel %vm437_vm9, 1.0, %v4324_v62  ;;  %2501 = vbcast.lane.b32.xlu1 %v2495_v49, 264  ;;  %1448 = vbcast.lane.b32.xlu0 %v1442_v50, 264 }
 0x13d   : > { %3802 = vmatprep.mubr.msk.f32.mxu1 %vm622_vm0, %v3381_v58  ;;  %3913 = vmatprep.mubr.msk.f32.mxu0 %vm622_vm0, %v3540_v57 }
 0x13e   : > { %v2085_v60 = vpop.permute.xlu1 %2084  ;;  %v395_v61 = vpop.permute.xlu0 %394  ;;  %3939 = vmatpush3.msra.mxu0 %v2554_v13 }
 0x13f   : > { %vm2155_vm10 = vcmp.eq.s32.totalorder %v4633_v59, %v2085_v60  ;;  %vm438_vm11 = vcmp.eq.s32.totalorder %v4633_v59, %v395_v61 }
 0x140   : > { %v3541_v18 = vsel %vm2155_vm10, 1.0, %v4324_v62  ;;  %v3382_v63 = vsel %vm438_vm11, 1.0, %v4324_v62 }
 0x141   : > { %3803 = vmatmul.mubr.msk.f32.gmra.mrb[8].mxu1 %vm622_vm0, %v3382_v63  ;;  %3914 = vmatmul.mubr.msk.f32.gmra.mrb[2].mxu0 %vm622_vm0, %v3541_v18 }
 0x142   : > { %v2092_v5 = vpop.permute.xlu1 %2091  ;;  %v402_v6 = vpop.permute.xlu0 %401 }
 0x143   : > { %vm2156_vm12 = vcmp.eq.s32.totalorder %v4633_v59, %v2092_v5  ;;  %vm439_vm13 = vcmp.eq.s32.totalorder %v4633_v59, %v402_v6 }
 0x144   : > { %v3542_v0 = vsel %vm2156_vm12, 1.0, %v4324_v62  ;;  %v3383_v8 = vsel %vm439_vm13, 1.0, %v4324_v62 }
 0x145   : > { %3805 = vmatprep.mubr.msk.f32.mxu1 %vm622_vm0, %v3383_v8  ;;  %3916 = vmatprep.mubr.msk.f32.mxu0 %vm622_vm0, %v3542_v0 }
 0x146   : > { %v2096_v9 = vpop.permute.xlu1 %2095  ;;  %v406_v10 = vpop.permute.xlu0 %405 }
 0x147   : > { %vm2157_vm14 = vcmp.eq.s32.totalorder %v4633_v59, %v2096_v9  ;;  %vm440_vm15 = vcmp.eq.s32.totalorder %v4633_v59, %v406_v10 }
 0x148   : > { %v3543_v11 = vsel %vm2157_vm14, 1.0, %v4324_v62  ;;  %v3384_v52 = vsel %vm440_vm15, 1.0, %v4324_v62 }
 0x149   : > { %3806 = vmatmul.mubr.msk.f32.gmra.mrb[10].mxu1 %vm622_vm0, %v3384_v52  ;;  %3917 = vmatmul.mubr.msk.f32.gmra.mrb[4].mxu0 %vm622_vm0, %v3543_v11 }
 0x14a   : > { %v2103_v12 = vpop.permute.xlu1 %2102  ;;  %v413_v14 = vpop.permute.xlu0 %412 }
 0x14b   : > { %vm2158_vm1 = vcmp.eq.s32.totalorder %v4633_v59, %v2103_v12  ;;  %vm441_vm2 = vcmp.eq.s32.totalorder %v4633_v59, %v413_v14 }
 0x14c   : > { %v3544_v16 = vsel %vm2158_vm1, 1.0, %v4324_v62  ;;  %v3385_v20 = vsel %vm441_vm2, 1.0, %v4324_v62 }
 0x14d   : > { %3808 = vmatprep.mubr.msk.f32.mxu1 %vm622_vm0, %v3385_v20  ;;  %3919 = vmatprep.mubr.msk.f32.mxu0 %vm622_vm0, %v3544_v16 }
 0x14e   : > { %v2107_v21 = vpop.permute.xlu1 %2106  ;;  %v417_v32 = vpop.permute.xlu0 %416 }
 0x14f   : > { %vm2159_vm3 = vcmp.eq.s32.totalorder %v4633_v59, %v2107_v21  ;;  %vm442_vm4 = vcmp.eq.s32.totalorder %v4633_v59, %v417_v32 }
 0x150   : > { %v3545_v23 = vsel %vm2159_vm3, 1.0, %v4324_v62  ;;  %v3386_v24 = vsel %vm442_vm4, 1.0, %v4324_v62 }
 0x151   : > { %3809 = vmatmul.mubr.msk.f32.gmra.mrb[12].mxu1 %vm622_vm0, %v3386_v24  ;;  %3920 = vmatmul.mubr.msk.f32.gmra.mrb[6].mxu0 %vm622_vm0, %v3545_v23 }
 0x152   : > { %v2114_v19 = vpop.permute.xlu1 %2113  ;;  %v424_v25 = vpop.permute.xlu0 %423 }
 0x153   : > { %vm2160_vm5 = vcmp.eq.s32.totalorder %v4633_v59, %v2114_v19  ;;  %vm443_vm6 = vcmp.eq.s32.totalorder %v4633_v59, %v424_v25 }
 0x154   : > { %v3546_v26 = vsel %vm2160_vm5, 1.0, %v4324_v62  ;;  %v3387_v37 = vsel %vm443_vm6, 1.0, %v4324_v62 }
 0x155   : > { %3811 = vmatprep.mubr.msk.f32.mxu1 %vm622_vm0, %v3387_v37  ;;  %3922 = vmatprep.mubr.msk.f32.mxu0 %vm622_vm0, %v3546_v26 }
 0x156   : > { %v2118_v27 = vpop.permute.xlu1 %2117  ;;  %v428_v28 = vpop.permute.xlu0 %427 }
 0x157   : > { %vm2161_vm7 = vcmp.eq.s32.totalorder %v4633_v59, %v2118_v27  ;;  %vm444_vm8 = vcmp.eq.s32.totalorder %v4633_v59, %v428_v28 }
 0x158   : > { %v3547_v29 = vsel %vm2161_vm7, 1.0, %v4324_v62  ;;  %v3388_v30 = vsel %vm444_vm8, 1.0, %v4324_v62 }
 0x159   : > { %3812 = vmatmul.mubr.msk.f32.gmra.mrb[14].mxu1 %vm622_vm0, %v3388_v30  ;;  %3923 = vmatmul.mubr.msk.f32.gmra.mrb[8].mxu0 %vm622_vm0, %v3547_v29 }
 0x15a   : > { %v2125_v31 = vpop.permute.xlu1 %2124  ;;  %v1017_v34 = vpop.permute.xlu0 %1016 }
 0x15b   : > { %vm2162_vm9 = vcmp.eq.s32.totalorder %v4633_v59, %v2125_v31  ;;  %vm1099_vm10 = vcmp.eq.s32.totalorder %v4633_v59, %v1017_v34 }
 0x15c   : > { %v3548_v35 = vsel %vm2162_vm9, 1.0, %v4324_v62  ;;  %v3439_v38 = vsel %vm1099_vm10, 1.0, %v4324_v62 }
 0x15d   : > { %3820 = vmatprep.mubr.msk.f32.mxu1 %vm622_vm0, %v3439_v38  ;;  %3925 = vmatprep.mubr.msk.f32.mxu0 %vm622_vm0, %v3548_v35 }
 0x15e   : > { %v2129_v40 = vpop.permute.xlu1 %2128  ;;  %v1021_v41 = vpop.permute.xlu0 %1020 }
 0x15f   : > { %vm2163_vm11 = vcmp.eq.s32.totalorder %v4633_v59, %v2129_v40  ;;  %vm1100_vm12 = vcmp.eq.s32.totalorder %v4633_v59, %v1021_v41 }
 0x160   : > { %v3549_v43 = vsel %vm2163_vm11, 1.0, %v4324_v62  ;;  %v3440_v42 = vsel %vm1100_vm12, 1.0, %v4324_v62 }
 0x161   : > { %3821 = vmatmul.mubr.msk.f32.vlgmr.msra.gmra.mrb[0].mxu1 %vm622_vm0, %v3440_v42  ;;  %3926 = vmatmul.mubr.msk.f32.gmra.mrb[10].mxu0 %vm622_vm0, %v3549_v43 }
 0x162   : > { %v2136_v44 = vpop.permute.xlu1 %2135  ;;  %v1028_v45 = vpop.permute.xlu0 %1027  ;;  %4021 = vmatpush3.bf16.msra.mxu1 %v4556_v15 }
 0x163   : > { %vm2164_vm13 = vcmp.eq.s32.totalorder %v4633_v59, %v2136_v44  ;;  %vm1101_vm14 = vcmp.eq.s32.totalorder %v4633_v59, %v1028_v45  ;;  %4020 = vmatprep.subr.mxu1 %v4188_v46 }
 0x164   : > { %v3550_v47 = vsel %vm2164_vm13, 1.0, %v4324_v62  ;;  %v3441_v48 = vsel %vm1101_vm14, 1.0, %v4324_v62 }
 0x165   : > { %3823 = vmatprep.mubr.msk.f32.mxu1 %vm622_vm0, %v3441_v48  ;;  %3928 = vmatprep.mubr.msk.f32.mxu0 %vm622_vm0, %v3550_v47 }
 0x166   : > { %v2140_v49 = vpop.permute.xlu1 %2139  ;;  %v1032_v50 = vpop.permute.xlu0 %1031  ;;  %4022 = vmatpush3.msra.mxu1 %v4188_v46 }
 0x167   : > { %vm2165_vm15 = vcmp.eq.s32.totalorder %v4633_v59, %v2140_v49  ;;  %vm1102_vm1 = vcmp.eq.s32.totalorder %v4633_v59, %v1032_v50 }
 0x168   : > { %v3551_v15 = vsel %vm2165_vm15, 1.0, %v4324_v62  ;;  %v3442_v51 = vsel %vm1102_vm1, 1.0, %v4324_v62 }
 0x169   : > { %3824 = vmatmul.mubr.msk.f32.gmra.mrb[2].mxu1 %vm622_vm0, %v3442_v51  ;;  %3929 = vmatmul.mubr.msk.f32.gmra.mrb[12].mxu0 %vm622_vm0, %v3551_v15 }
 0x16a   : > { %v2147_v53 = vpop.permute.xlu1 %2146  ;;  %v1039_v54 = vpop.permute.xlu0 %1038 }
 0x16b   : > { %vm2166_vm2 = vcmp.eq.s32.totalorder %v4633_v59, %v2147_v53  ;;  %vm1103_vm3 = vcmp.eq.s32.totalorder %v4633_v59, %v1039_v54 }
 0x16c   : > { %v3552_v55 = vsel %vm2166_vm2, 1.0, %v4324_v62  ;;  %v3443_v13 = vsel %vm1103_vm3, 1.0, %v4324_v62 }
 0x16d   : > { %3826 = vmatprep.mubr.msk.f32.mxu1 %vm622_vm0, %v3443_v13  ;;  %3931 = vmatprep.mubr.msk.f32.mxu0 %vm622_vm0, %v3552_v55 }
 0x16e   : > { %v2151_v4 = vpop.permute.xlu1 %2150  ;;  %v1043_v56 = vpop.permute.xlu0 %1042 }
 0x16f   : > { %vm2167_vm4 = vcmp.eq.s32.totalorder %v4633_v59, %v2151_v4  ;;  %vm1104_vm5 = vcmp.eq.s32.totalorder %v4633_v59, %v1043_v56 }
 0x170   : > { %v3553_v57 = vsel %vm2167_vm4, 1.0, %v4324_v62  ;;  %v3444_v58 = vsel %vm1104_vm5, 1.0, %v4324_v62 }
 0x171   : > { %3827 = vmatmul.mubr.msk.f32.gmra.mrb[4].mxu1 %vm622_vm0, %v3444_v58  ;;  %3932 = vmatmul.mubr.msk.f32.gmra.mrb[14].mxu0 %vm622_vm0, %v3553_v57 }
 0x172   : > { %v2421_v60 = vpop.permute.xlu1 %2420  ;;  %v1050_v61 = vpop.permute.xlu0 %1049 }
 0x173   : > { %vm2503_vm6 = vcmp.eq.s32.totalorder %v4633_v59, %v2421_v60  ;;  %vm1105_vm7 = vcmp.eq.s32.totalorder %v4633_v59, %v1050_v61 }
 0x174   : > { %v3571_v18 = vsel %vm2503_vm6, 1.0, %v4324_v62  ;;  %v3445_v63 = vsel %vm1105_vm7, 1.0, %v4324_v62 }
 0x175   : > { %3829 = vmatprep.mubr.msk.f32.mxu1 %vm622_vm0, %v3445_v63  ;;  %3940 = vmatprep.mubr.msk.f32.mxu0 %vm622_vm0, %v3571_v18 }
 0x176   : > { %v2425_v5 = vpop.permute.xlu1 %2424  ;;  %v1054_v6 = vpop.permute.xlu0 %1053 }
 0x177   : > { %vm2504_vm8 = vcmp.eq.s32.totalorder %v4633_v59, %v2425_v5  ;;  %vm1106_vm9 = vcmp.eq.s32.totalorder %v4633_v59, %v1054_v6 }
 0x178   : > { %v3572_v0 = vsel %vm2504_vm8, 1.0, %v4324_v62  ;;  %v3446_v8 = vsel %vm1106_vm9, 1.0, %v4324_v62 }
 0x179   : > { %3830 = vmatmul.mubr.msk.f32.gmra.mrb[6].mxu1 %vm622_vm0, %v3446_v8  ;;  %3941 = vmatmul.mubr.msk.f32.vlgmr.msra.gmra.mrb[0].mxu0 %vm622_vm0, %v3572_v0 }
 0x17a   : > { %v2432_v9 = vpop.permute.xlu1 %2431  ;;  %v1061_v10 = vpop.permute.xlu0 %1060 }
 0x17b   : > { %vm2505_vm10 = vcmp.eq.s32.totalorder %v4633_v59, %v2432_v9  ;;  %vm1107_vm11 = vcmp.eq.s32.totalorder %v4633_v59, %v1061_v10 }
 0x17c   : > { %v3573_v11 = vsel %vm2505_vm10, 1.0, %v4324_v62  ;;  %v3447_v52 = vsel %vm1107_vm11, 1.0, %v4324_v62 }
 0x17d   : > { %3832 = vmatprep.mubr.msk.f32.mxu1 %vm622_vm0, %v3447_v52  ;;  %3943 = vmatprep.mubr.msk.f32.mxu0 %vm622_vm0, %v3573_v11  ;;  %v2897_v52 = vld [vmem:[%s5208_s3] sm:$0xff] }
 0x17e   : > { %v2436_v12 = vpop.permute.xlu1 %2435  ;;  %v1065_v14 = vpop.permute.xlu0 %1064 }
 0x17f   : > { %vm2506_vm12 = vcmp.eq.s32.totalorder %v4633_v59, %v2436_v12  ;;  %vm1108_vm13 = vcmp.eq.s32.totalorder %v4633_v59, %v1065_v14  ;;  %v2898_v12 = vld [vmem:[%s5208_s3 + $0x8] sm:$0xff] }
 0x180   : > { %v3574_v16 = vsel %vm2506_vm12, 1.0, %v4324_v62  ;;  %v3448_v20 = vsel %vm1108_vm13, 1.0, %v4324_v62  ;;  %v4011_v14 = vpack.c.bf16 %v2898_v12, %v2897_v52 }
 0x181   : > { %3833 = vmatmul.mubr.msk.f32.gmra.mrb[8].mxu1 %vm622_vm0, %v3448_v20  ;;  %3944 = vmatmul.mubr.msk.f32.gmra.mrb[2].mxu0 %vm622_vm0, %v3574_v16  ;;  %v4325_v16 = vmov 0.0|0.0   ;;  %v2900_v20 = vld [vmem:[%s5208_s3 + $0x18] sm:$0xff] }
 0x182   : > { %v2443_v21 = vpop.permute.xlu1 %2442  ;;  %v1072_v32 = vpop.permute.xlu0 %1071  ;;  %4010 = vmatprep.subr.bf16.mxu1 %v4325_v16 }
 0x183   : > { %vm2507_vm14 = vcmp.eq.s32.totalorder %v4633_v59, %v2443_v21  ;;  %vm1109_vm15 = vcmp.eq.s32.totalorder %v4633_v59, %v1072_v32 }
 0x184   : > { %v3575_v23 = vsel %vm2507_vm14, 1.0, %v4324_v62  ;;  %v3449_v24 = vsel %vm1109_vm15, 1.0, %v4324_v62 }
 0x185   : > { %3835 = vmatprep.mubr.msk.f32.mxu1 %vm622_vm0, %v3449_v24  ;;  %3946 = vmatprep.mubr.msk.f32.mxu0 %vm622_vm0, %v3575_v23 }
 0x186   : > { %v2447_v19 = vpop.permute.xlu1 %2446  ;;  %v1076_v25 = vpop.permute.xlu0 %1075 }
 0x187   : > { %vm2508_vm1 = vcmp.eq.s32.totalorder %v4633_v59, %v2447_v19  ;;  %vm1110_vm2 = vcmp.eq.s32.totalorder %v4633_v59, %v1076_v25 }
 0x188   : > { %v3576_v26 = vsel %vm2508_vm1, 1.0, %v4324_v62  ;;  %v3450_v37 = vsel %vm1110_vm2, 1.0, %v4324_v62 }
 0x189   : > { %3836 = vmatmul.mubr.msk.f32.gmra.mrb[10].mxu1 %vm622_vm0, %v3450_v37  ;;  %3947 = vmatmul.mubr.msk.f32.gmra.mrb[4].mxu0 %vm622_vm0, %v3576_v26 }
 0x18a   : > { %v2454_v27 = vpop.permute.xlu1 %2453  ;;  %v1083_v28 = vpop.permute.xlu0 %1082 }
 0x18b   : > { %vm2509_vm3 = vcmp.eq.s32.totalorder %v4633_v59, %v2454_v27  ;;  %vm1111_vm4 = vcmp.eq.s32.totalorder %v4633_v59, %v1083_v28  ;;  %v5062_v28 = vld [vmem:[%s5207_s2] ss:$0 sm:$0xff] }
 0x18c   : > { %v3577_v29 = vsel %vm2509_vm3, 1.0, %v4324_v62  ;;  %v3451_v30 = vsel %vm1111_vm4, 1.0, %v4324_v62 }
 0x18d   : > { %3838 = vmatprep.mubr.msk.f32.mxu1 %vm622_vm0, %v3451_v30  ;;  %3949 = vmatprep.mubr.msk.f32.mxu0 %vm622_vm0, %v3577_v29 }
 0x18e   : > { %v2458_v31 = vpop.permute.xlu1 %2457  ;;  %v1087_v34 = vpop.permute.xlu0 %1086 }
 0x18f   : > { %vm2510_vm5 = vcmp.eq.s32.totalorder %v4633_v59, %v2458_v31  ;;  %vm1112_vm6 = vcmp.eq.s32.totalorder %v4633_v59, %v1087_v34 }
 0x190   : > { %v3578_v35 = vsel %vm2510_vm5, 1.0, %v4324_v62  ;;  %v3452_v38 = vsel %vm1112_vm6, 1.0, %v4324_v62 }
 0x191   : > { %3839 = vmatmul.mubr.msk.f32.gmra.mrb[12].mxu1 %vm622_vm0, %v3452_v38  ;;  %3950 = vmatmul.mubr.msk.f32.gmra.mrb[6].mxu0 %vm622_vm0, %v3578_v35 }
 0x192   : > { %v2465_v40 = vpop.permute.xlu1 %2464  ;;  %v1094_v41 = vpop.permute.xlu0 %1093 }
 0x193   : > { %vm2511_vm7 = vcmp.eq.s32.totalorder %v4633_v59, %v2465_v40  ;;  %vm1113_vm8 = vcmp.eq.s32.totalorder %v4633_v59, %v1094_v41 }
 0x194   : > { %v3579_v43 = vsel %vm2511_vm7, 1.0, %v4324_v62  ;;  %v3453_v42 = vsel %vm1113_vm8, 1.0, %v4324_v62  ;;  %vm2806_vm8 = vcmp.ge.s32.totalorder %v4531_v1, 1 }
 0x195   : > { %3841 = vmatprep.mubr.msk.f32.mxu1 %vm622_vm0, %v3453_v42  ;;  %3952 = vmatprep.mubr.msk.f32.mxu0 %vm622_vm0, %v3579_v43 }
 0x196   : > { %v2469_v44 = vpop.permute.xlu1 %2468  ;;  %v1098_v45 = vpop.permute.xlu0 %1097 }
 0x197   : > { %vm2512_vm9 = vcmp.eq.s32.totalorder %v4633_v59, %v2469_v44  ;;  %vm1114_vm10 = vcmp.eq.s32.totalorder %v4633_v59, %v1098_v45 }
 0x198   : > { %v3580_v46 = vsel %vm2512_vm9, 1.0, %v4324_v62  ;;  %v3454_v47 = vsel %vm1114_vm10, 1.0, %v4324_v62  ;;  %vm2824_vm9 = vcmask 261120   ;;  %vm2916_vm10 = vcmask 1041409  }
 0x199   : > { %3842 = vmatmul.mubr.msk.f32.gmra.mrb[14].mxu1 %vm622_vm0, %v3454_v47  ;;  %3953 = vmatmul.mubr.msk.f32.gmra.mrb[8].mxu0 %vm622_vm0, %v3580_v46 }
 0x19a   : > { %v2476_v48 = vpop.permute.xlu1 %2475  ;;  %v1423_v49 = vpop.permute.xlu0 %1422 }
 0x19b   : > { %vm2513_vm11 = vcmp.eq.s32.totalorder %v4633_v59, %v2476_v48  ;;  %vm1460_vm12 = vcmp.eq.s32.totalorder %v4633_v59, %v1423_v49 }
 0x19c   : > { %v3581_v50 = vsel %vm2513_vm11, 1.0, %v4324_v62  ;;  %v3482_v15 = vsel %vm1460_vm12, 1.0, %v4324_v62  ;;  %vm2918_vm11 = vcmask 1042434   ;;  %vm2920_vm12 = vcmask 1043459  }
 0x19d   : > { %3865 = vmatprep.mubr.msk.f32.mxu1 %vm622_vm0, %v3482_v15  ;;  %3955 = vmatprep.mubr.msk.f32.mxu0 %vm622_vm0, %v3581_v50 }
 0x19e   : > { %v2480_v51 = vpop.permute.xlu1 %2479  ;;  %v1427_v53 = vpop.permute.xlu0 %1426 }
 0x19f   : > { %vm2514_vm13 = vcmp.eq.s32.totalorder %v4633_v59, %v2480_v51  ;;  %vm1461_vm14 = vcmp.eq.s32.totalorder %v4633_v59, %v1427_v53 }
 0x1a0   : > { %v3582_v54 = vsel %vm2514_vm13, 1.0, %v4324_v62  ;;  %v3483_v55 = vsel %vm1461_vm14, 1.0, %v4324_v62  ;;  %vm2922_vm13 = vcmask 1044484   ;;  %vm2924_vm14 = vcmask 1045509  }
 0x1a1   : > { %3866 = vmatmul.mubr.msk.f32.vlgmr.msra.gmra.mrb[10].mxu1 %vm622_vm0, %v3483_v55  ;;  %3956 = vmatmul.mubr.msk.f32.gmra.mrb[10].mxu0 %vm622_vm0, %v3582_v54 }
 0x1a2   : > { %v2487_v13 = vpop.permute.xlu1 %2486  ;;  %v1434_v4 = vpop.permute.xlu0 %1433  ;;  %4012 = vmatpush3.bf16.msra.mxu1 %v4011_v14 }
 0x1a3   : > { %vm2515_vm15 = vcmp.eq.s32.totalorder %v4633_v59, %v2487_v13  ;;  %vm1462_vm1 = vcmp.eq.s32.totalorder %v4633_v59, %v1434_v4  ;;  %4013 = vmatprep.subr.bf16.mxu1 %v4325_v16 }
 0x1a4   : > { %v3583_v56 = vsel %vm2515_vm15, 1.0, %v4324_v62  ;;  %v3484_v57 = vsel %vm1462_vm1, 1.0, %v4324_v62  ;;  %vm2926_vm15 = vcmask 1046534   ;;  %vm2928_vm1 = vcmask 1047559  }
 0x1a5   : > { %3868 = vmatprep.mubr.msk.f32.mxu1 %vm622_vm0, %v3484_v57  ;;  %3958 = vmatprep.mubr.msk.f32.mxu0 %vm622_vm0, %v3583_v56 }
 0x1a6   : > { %v2491_v58 = vpop.permute.xlu1 %2490  ;;  %v1438_v60 = vpop.permute.xlu0 %1437 }
 0x1a7   : > { %vm2516_vm2 = vcmp.eq.s32.totalorder %v4633_v59, %v2491_v58  ;;  %vm1463_vm3 = vcmp.eq.s32.totalorder %v4633_v59, %v1438_v60 }
 0x1a8   : > { %v3584_v61 = vsel %vm2516_vm2, 1.0, %v4324_v62  ;;  %v3485_v18 = vsel %vm1463_vm3, 1.0, %v4324_v62  ;;  %vm3012_vm2 = vcmask 130048  }
 0x1a9   : > { %3869 = vmatmul.mubr.msk.f32.gmra.mrb[12].mxu1 %vm622_vm0, %v3485_v18  ;;  %3959 = vmatmul.mubr.msk.f32.gmra.mrb[12].mxu0 %vm622_vm0, %v3584_v61 }
 0x1aa   : > { %v2498_v63 = vpop.permute.xlu1 %2497  ;;  %v1445_v5 = vpop.permute.xlu0 %1444 }
 0x1ab   : > { %vm2517_vm4 = vcmp.eq.s32.totalorder %v4633_v59, %v2498_v63  ;;  %vm1464_vm5 = vcmp.eq.s32.totalorder %v4633_v59, %v1445_v5 }
 0x1ac   : > { %v3585_v6 = vsel %vm2517_vm4, 1.0, %v4324_v62  ;;  %v3486_v0 = vsel %vm1464_vm5, 1.0, %v4324_v62 }
 0x1ad   : > { %3871 = vmatprep.mubr.msk.f32.mxu1 %vm622_vm0, %v3486_v0  ;;  %3961 = vmatprep.mubr.msk.f32.mxu0 %vm622_vm0, %v3585_v6 }
 0x1ae   : > { %v2502_v8 = vpop.permute.xlu1 %2501  ;;  %v1449_v9 = vpop.permute.xlu0 %1448 }
 0x1af   : > { %vm2518_vm6 = vcmp.eq.s32.totalorder %v4633_v59, %v2502_v8  ;;  %vm1465_vm7 = vcmp.eq.s32.totalorder %v4633_v59, %v1449_v9  ;;  %v2899_v59 = vld [vmem:[%s5208_s3 + $0x10] sm:$0xff] }
 0x1b0   : > { %v3586_v10 = vsel %vm2518_vm6, 1.0, %v4324_v62  ;;  %v3487_v11 = vsel %vm1465_vm7, 1.0, %v4324_v62  ;;  %v4014_v21 = vpack.c.bf16 %v2900_v20, %v2899_v59 }
 0x1b1   : > { %3872 = vmatmul.mubr.msk.f32.gmra.mrb[14].mxu1 %vm622_vm0, %v3487_v11  ;;  %3962 = vmatmul.mubr.msk.f32.gmra.mrb[14].mxu0 %vm622_vm0, %v3586_v10  ;;  %vm4326_vm0 = vmmov 0  }
 0x1b2   : > { %3972 = vmatprep.mubr.msk.f32.mxu1 %vm4326_vm0, %v4324_v62  ;;  %4015 = vmatpush3.bf16.msra.mxu1 %v4014_v21 }
 0x1b3   : > { %4016 = vmatprep.subr.bf16.mxu1 %v4325_v16 }
 0x234   : > { %v3822_v32 = vpop.f32.mrb[0].mxu1 }
 0x235   : > { %v1265_v23 = vpop.f32.mrb[1].mxu1 }
 0x23c   : > { %v3825_v24 = vpop.f32.mrb[2].mxu1 }
 0x23d   : > { %v1275_v19 = vpop.f32.mrb[3].mxu1 }
 0x244   : > { %v3828_v25 = vpop.f32.mrb[4].mxu1 }
 0x245   : > { %v1285_v26 = vpop.f32.mrb[5].mxu1 }
 0x24c   : > { %v3831_v37 = vpop.f32.mrb[6].mxu1  ;;  %v3942_v27 = vpop.f32.mrb[0].mxu0 }
 0x24d   : > { %v4023_v29 = vadd.f32 %v3942_v27, %v3822_v32  ;;  %v1295_v30 = vpop.f32.mrb[7].mxu1  ;;  %v2669_v31 = vpop.f32.mrb[1].mxu0 }
 0x24e   : > { %v4024_v34 = vadd.f32 %v2669_v31, %v1265_v23 }
 0x24f   : > { %v2772_v35 = vadd.f32 %v4023_v29, %v5062_v28 }
 0x250   : > { %v2771_v38 = vadd.f32 %v4024_v34, %v5062_v28 }
 0x251   : > { %v2788_v40 = vmax.f32 %v2772_v35, 0.0 }
 0x252   : > { %v2787_v41 = vmax.f32 %v2771_v38, 0.0 }
 0x253   : > { %v2826_v45 = vsel %vm2824_vm9, %v2788_v40, -inf }
 0x254   : > { %v2808_v43 = vsel %vm2806_vm8, %v2787_v41, -inf  ;;  %v3834_v42 = vpop.f32.mrb[8].mxu1  ;;  %v3945_v44 = vpop.f32.mrb[2].mxu0 }
 0x255   : > { %v2825_v46 = vsel %vm2824_vm9, %v2808_v43, -inf  ;;  %v4025_v47 = vadd.f32 %v3945_v44, %v3825_v24  ;;  %v1305_v48 = vpop.f32.mrb[9].mxu1  ;;  %v2679_v49 = vpop.f32.mrb[3].mxu0 }
 0x256   : > { %v2827_v50 = vmax.f32 %v2825_v46, %v2826_v45  ;;  %v4026_v15 = vadd.f32 %v2679_v49, %v1275_v19 }
 0x257   : > { %v2774_v51 = vadd.f32 %v4025_v47, %v5062_v28 }
 0x258   : > { %v2828_v53 = vrot.slane %v2827_v50, 4  ;;  %v2773_v54 = vadd.f32 %v4026_v15, %v5062_v28 }
 0x259   : > { %v2790_v55 = vmax.f32 %v2774_v51, 0.0 }
 0x25a   : > { %v2829_v13 = vmax.f32 %v2827_v50, %v2828_v53  ;;  %v2789_v4 = vmax.f32 %v2773_v54, 0.0 }
 0x25b   : > { %v2835_v58 = vsel %vm2824_vm9, %v2790_v55, -inf }
 0x25c   : > { %v2810_v56 = vsel %vm2806_vm8, %v2789_v4, -inf  ;;  %v3948_v57 = vpop.f32.mrb[4].mxu0  ;;  %v2830_v63 = vrot.slane %v2829_v13, 2 }
 0x25d   : > { %v2834_v60 = vsel %vm2824_vm9, %v2810_v56, -inf  ;;  %v4027_v61 = vadd.f32 %v3948_v57, %v3828_v25  ;;  %v2689_v18 = vpop.f32.mrb[5].mxu0 }
 0x25e   : > { %v2836_v5 = vmax.f32 %v2834_v60, %v2835_v58  ;;  %v4028_v6 = vadd.f32 %v2689_v18, %v1285_v26  ;;  %v2831_v11 = vmax.f32 %v2829_v13, %v2830_v63 }
 0x25f   : > { %v2776_v0 = vadd.f32 %v4027_v61, %v5062_v28 }
 0x260   : > { %v2837_v8 = vrot.slane %v2836_v5, 4  ;;  %v2775_v9 = vadd.f32 %v4028_v6, %v5062_v28  ;;  %v2832_v24 = vrot.slane %v2831_v11, 1 }
 0x261   : > { %v2792_v10 = vmax.f32 %v2776_v0, 0.0 }
 0x262   : > { %v2838_v52 = vmax.f32 %v2836_v5, %v2837_v8  ;;  %v2791_v12 = vmax.f32 %v2775_v9, 0.0  ;;  %v2833_v38 = vmax.f32 %v2831_v11, %v2832_v24 }
 0x263   : > { %v2844_v20 = vsel %vm2824_vm9, %v2792_v10, -inf }
 0x264   : > { %v2839_v14 = vrot.slane %v2838_v52, 2  ;;  %v2812_v16 = vsel %vm2806_vm8, %v2791_v12, -inf  ;;  %v3951_v59 = vpop.f32.mrb[6].mxu0 }
 0x265   : > { %v2843_v21 = vsel %vm2824_vm9, %v2812_v16, -inf  ;;  %v4029_v32 = vadd.f32 %v3951_v59, %v3831_v37  ;;  %v2699_v23 = vpop.f32.mrb[7].mxu0 }
 0x266   : > { %v2840_v19 = vmax.f32 %v2838_v52, %v2839_v14  ;;  %v2845_v25 = vmax.f32 %v2843_v21, %v2844_v20  ;;  %v4030_v26 = vadd.f32 %v2699_v23, %v1295_v30 }
 0x267   : > { %v2778_v27 = vadd.f32 %v4029_v32, %v5062_v28 }
 0x268   : > { %v2841_v29 = vrot.slane %v2840_v19, 1  ;;  %v2846_v31 = vrot.slane %v2845_v25, 4  ;;  %v2777_v34 = vadd.f32 %v4030_v26, %v5062_v28 }
 0x269   : > { %v2794_v35 = vmax.f32 %v2778_v27, 0.0 }
 0x26a   : > { %v2842_v40 = vmax.f32 %v2840_v19, %v2841_v29  ;;  %v2847_v41 = vmax.f32 %v2845_v25, %v2846_v31  ;;  %v2793_v43 = vmax.f32 %v2777_v34, 0.0 }
 0x26b   : > { %v2853_v30 = vsel %vm2824_vm9, %v2794_v35, -inf }
 0x26c   : > { %v2917_v44 = vsel %vm2916_vm10, %v2842_v40, %v2833_v38  ;;  %v2848_v37 = vrot.slane %v2847_v41, 2  ;;  %v2814_v45 = vsel %vm2806_vm8, %v2793_v43, -inf  ;;  %v3954_v46 = vpop.f32.mrb[8].mxu0 }
 0x26d   : > { %v2852_v47 = vsel %vm2824_vm9, %v2814_v45, -inf  ;;  %v4031_v49 = vadd.f32 %v3954_v46, %v3834_v42  ;;  %v2709_v50 = vpop.f32.mrb[9].mxu0 }
 0x26e   : > { %v2849_v15 = vmax.f32 %v2847_v41, %v2848_v37  ;;  %v2854_v51 = vmax.f32 %v2852_v47, %v2853_v30  ;;  %v4032_v53 = vadd.f32 %v2709_v50, %v1305_v48 }
 0x26f   : > { %v2780_v54 = vadd.f32 %v4031_v49, %v5062_v28 }
 0x270   : > { %v2850_v55 = vrot.slane %v2849_v15, 1  ;;  %v2855_v13 = vrot.slane %v2854_v51, 4  ;;  %v2779_v4 = vadd.f32 %v4032_v53, %v5062_v28 }
 0x271   : > { %v2796_v56 = vmax.f32 %v2780_v54, 0.0 }
 0x272   : > { %v2851_v57 = vmax.f32 %v2849_v15, %v2850_v55  ;;  %v2856_v58 = vmax.f32 %v2854_v51, %v2855_v13  ;;  %v2795_v60 = vmax.f32 %v2779_v4, 0.0 }
 0x273   : > { %v2862_v48 = vsel %vm2824_vm9, %v2796_v56, -inf }
 0x274   : > { %v2919_v61 = vsel %vm2918_vm11, %v2851_v57, %v2917_v44  ;;  %v2857_v18 = vrot.slane %v2856_v58, 2  ;;  %v2816_v42 = vsel %vm2806_vm8, %v2795_v60, -inf  ;;  %v3867_v63 = vpop.f32.mrb[10].mxu1  ;;  %v3957_v5 = vpop.f32.mrb[10].mxu0 }
 0x275   : > { %v2861_v6 = vsel %vm2824_vm9, %v2816_v42, -inf  ;;  %v4033_v0 = vadd.f32 %v3957_v5, %v3867_v63  ;;  %v1666_v8 = vpop.f32.mrb[11].mxu1  ;;  %v2719_v9 = vpop.f32.mrb[11].mxu0 }
 0x276   : > { %v2858_v10 = vmax.f32 %v2856_v58, %v2857_v18  ;;  %v2863_v11 = vmax.f32 %v2861_v6, %v2862_v48  ;;  %v4034_v52 = vadd.f32 %v2719_v9, %v1666_v8 }
 0x277   : > { %v2782_v12 = vadd.f32 %v4033_v0, %v5062_v28 }
 0x278   : > { %v2859_v14 = vrot.slane %v2858_v10, 1  ;;  %v2864_v16 = vrot.slane %v2863_v11, 4  ;;  %v2781_v59 = vadd.f32 %v4034_v52, %v5062_v28 }
 0x279   : > { %v2798_v20 = vmax.f32 %v2782_v12, 0.0 }
 0x27a   : > { %v2860_v21 = vmax.f32 %v2858_v10, %v2859_v14  ;;  %v2865_v32 = vmax.f32 %v2863_v11, %v2864_v16  ;;  %v2797_v23 = vmax.f32 %v2781_v59, 0.0 }
 0x27b   : > { %v2871_v29 = vsel %vm2824_vm9, %v2798_v20, -inf }
 0x27c   : > { %v2866_v24 = vrot.slane %v2865_v32, 2  ;;  %v2818_v19 = vsel %vm2806_vm8, %v2797_v23, -inf  ;;  %v3870_v25 = vpop.f32.mrb[12].mxu1  ;;  %v3960_v26 = vpop.f32.mrb[12].mxu0  ;;  %v2921_v27 = vsel %vm2920_vm12, %v2860_v21, %v2919_v61 }
 0x27d   : > { %v2870_v31 = vsel %vm2824_vm9, %v2818_v19, -inf  ;;  %v4035_v34 = vadd.f32 %v3960_v26, %v3870_v25  ;;  %v1676_v35 = vpop.f32.mrb[13].mxu1  ;;  %v2729_v38 = vpop.f32.mrb[13].mxu0 }
 0x27e   : > { %v2867_v40 = vmax.f32 %v2865_v32, %v2866_v24  ;;  %v2872_v41 = vmax.f32 %v2870_v31, %v2871_v29  ;;  %v4036_v43 = vadd.f32 %v2729_v38, %v1676_v35  ;;  %v3004_v29 = vld [vmem:[%s5210_s5 + $0x8] sm:$0xff] }
 0x27f   : > { %v2784_v44 = vadd.f32 %v4035_v34, %v5062_v28  ;;  %v3604_v34 = vld [vmem:[%s5209_s4] ss:$0 sm:$0xff] }
 0x280   : > { %v2868_v37 = vrot.slane %v2867_v40, 1  ;;  %v2873_v45 = vrot.slane %v2872_v41, 4  ;;  %v2783_v46 = vadd.f32 %v4036_v43, %v5062_v28 }
 0x281   : > { %v2800_v30 = vmax.f32 %v2784_v44, 0.0 }
 0x282   : > { %v2869_v47 = vmax.f32 %v2867_v40, %v2868_v37  ;;  %v2874_v49 = vmax.f32 %v2872_v41, %v2873_v45  ;;  %v2799_v50 = vmax.f32 %v2783_v46, 0.0 }
 0x283   : > { %v2880_v13 = vsel %vm2824_vm9, %v2800_v30, -inf }
 0x284   : > { %v2875_v15 = vrot.slane %v2874_v49, 2  ;;  %v2820_v51 = vsel %vm2806_vm8, %v2799_v50, -inf  ;;  %v3873_v53 = vpop.f32.mrb[14].mxu1  ;;  %v3963_v54 = vpop.f32.mrb[14].mxu0  ;;  %v2923_v55 = vsel %vm2922_vm13, %v2869_v47, %v2921_v27  ;;  %v3003_v27 = vld [vmem:[%s5210_s5] sm:$0xff] }
 0x285   : > { %v2879_v4 = vsel %vm2824_vm9, %v2820_v51, -inf  ;;  %v4037_v56 = vadd.f32 %v3963_v54, %v3873_v53  ;;  %v1686_v57 = vpop.f32.mrb[15].mxu1  ;;  %v2739_v58 = vpop.f32.mrb[15].mxu0  ;;  %v4017_v31 = vpack.c.bf16 %v3004_v29, %v3003_v27 }
 0x286   : > { %v2876_v60 = vmax.f32 %v2874_v49, %v2875_v15  ;;  %v2881_v61 = vmax.f32 %v2879_v4, %v2880_v13  ;;  %v4038_v18 = vadd.f32 %v2739_v58, %v1686_v57 }
 0x287   : > { %v2786_v42 = vadd.f32 %v4037_v56, %v5062_v28 }
 0x288   : > { %v2877_v63 = vrot.slane %v2876_v60, 1  ;;  %v2882_v5 = vrot.slane %v2881_v61, 4  ;;  %v2785_v48 = vadd.f32 %v4038_v18, %v5062_v28 }
 0x289   : > { %v2802_v6 = vmax.f32 %v2786_v42, 0.0 }
 0x28a   : > { %v2878_v0 = vmax.f32 %v2876_v60, %v2877_v63  ;;  %v2883_v8 = vmax.f32 %v2881_v61, %v2882_v5  ;;  %v2801_v9 = vmax.f32 %v2785_v48, 0.0 }
 0x28b   : > { %v2889_v12 = vsel %vm2824_vm9, %v2802_v6, -inf }
 0x28c   : > { %v2884_v10 = vrot.slane %v2883_v8, 2  ;;  %v2822_v11 = vsel %vm2806_vm8, %v2801_v9, -inf  ;;  %v2925_v52 = vsel %vm2924_vm14, %v2878_v0, %v2923_v55 }
 0x28d   : > { %v2888_v14 = vsel %vm2824_vm9, %v2822_v11, -inf }
 0x28e   : > { %v2885_v16 = vmax.f32 %v2883_v8, %v2884_v10  ;;  %v2890_v59 = vmax.f32 %v2888_v14, %v2889_v12 }
 0x290   : > { %v2886_v20 = vrot.slane %v2885_v16, 1  ;;  %v2891_v21 = vrot.slane %v2890_v59, 4 }
 0x292   : > { %v2887_v28 = vmax.f32 %v2885_v16, %v2886_v20  ;;  %v2892_v32 = vmax.f32 %v2890_v59, %v2891_v21 }
 0x294   : > { %v2893_v23 = vrot.slane %v2892_v32, 2  ;;  %v2927_v24 = vsel %vm2926_vm15, %v2887_v28, %v2925_v52 }
 0x296   : > { %v2894_v19 = vmax.f32 %v2892_v32, %v2893_v23 }
 0x298   : > { %v2895_v25 = vrot.slane %v2894_v19, 1 }
 0x29a   : > { %v2896_v1 = vmax.f32 %v2894_v19, %v2895_v25 }
 0x29c   : > { %v2929_v26 = vsel %vm2928_vm1, %v2896_v1, %v2927_v24 }
 0x29d   : > { %3973 = vmatmul.mubr.msk.f32.vlgmr.msra.gmra.mrb[16].mxu1 %vm2824_vm9, %v2929_v26 }
 0x29e   : > { %3979 = vmatprep.mubr.msk.f32.mxu1 %vm4326_vm0, %v4324_v62  ;;  %4018 = vmatpush3.bf16.msra.mxu1 %v4017_v31  ;;  %v3606_v62 = vld [vmem:[%s5211_s6] ss:$0 sm:$0xff] }
 0x370   : > { %v2998_v35 = vpop.f32.mrb[16].mxu1 }
 0x371   : > { %v2999_v38 = vadd.f32 %v3604_v34, %v2998_v35  ;;  %v3974_v40 = vpop.f32.mrb[17].mxu1 }
 0x373   : > { %v3002_v41 = vmax.f32 %v2999_v38, 0.0 }
 0x375   : > { %3980 = vmatmul.mubr.msk.f32.vlgmr.msra.gmra.mrb[18].mxu1 %vm3012_vm2, %v3002_v41 }
 0x448   : > { %v3082_v43 = vpop.f32.mrb[18].mxu1 }
 0x449   : > { %v3083_v44 = vadd.f32 %v3606_v62, %v3082_v43  ;;  %v3981_v37 = vpop.f32.mrb[19].mxu1 }
 0x44b   : > { %v3608_v45 = vmul.f32 -1.442695, %v3083_v44 }
 0x44d   : > { %4184 = vpow2.f32 %v3608_v45 }
 0x457   : > { %v4185_v46 = vpop.eup %4184 }
 0x458   : > { %v3089_v30 = vadd.f32 1.0, %v4185_v46 }
 0x45a   : > { %4186 = vrcp.f32 %v3089_v30 }
 0x464   : > { %v4187_v47 = vpop.eup %4186 }
 0x465   : > { %v3095_v49 = vrot.slane %v4187_v47, %v4537_v3  ;;  %v3106_v50 = vrot.slane %v4187_v47, %v4534_v2  ;;  %v3117_v15 = vrot.slane %v4187_v47, %v4547_v7  ;;  %v3128_v51 = vrot.slane %v4187_v47, %v4559_v17 }
 0x466   : > { %v3139_v53 = vrot.slane %v4187_v47, %v4568_v22  ;;  %v3150_v3 = vrot.slane %v4187_v47, %v4585_v33  ;;  %v3161_v2 = vrot.slane %v4187_v47, %v4591_v36  ;;  %v3172_v7 = vrot.slane %v4187_v47, %v4597_v39  ;;  %v3181_v22 = vld [vmem:[%s5212_s7 + $0x8] sm:$0xff]  ;;  %v3180_v33 = vld [vmem:[%s5212_s7] sm:$0xff] }
 0x467   : > { %3101 = vbcast.lane.b32.xlu1 %v3095_v49, 264  ;;  %3097 = vbcast.lane.b32.xlu0 %v3095_v49, 256 }
 0x46b   : > { %3112 = vbcast.lane.b32.xlu1 %v3106_v50, 264  ;;  %3108 = vbcast.lane.b32.xlu0 %v3106_v50, 256 }
 0x46f   : > { %3123 = vbcast.lane.b32.xlu1 %v3117_v15, 264  ;;  %3119 = vbcast.lane.b32.xlu0 %v3117_v15, 256 }
 0x473   : > { %3134 = vbcast.lane.b32.xlu1 %v3128_v51, 264  ;;  %3130 = vbcast.lane.b32.xlu0 %v3128_v51, 256 }
 0x477   : > { %3145 = vbcast.lane.b32.xlu1 %v3139_v53, 264  ;;  %3141 = vbcast.lane.b32.xlu0 %v3139_v53, 256 }
 0x47b   : > { %3156 = vbcast.lane.b32.xlu1 %v3150_v3, 264  ;;  %3152 = vbcast.lane.b32.xlu0 %v3150_v3, 256 }
 0x47f   : > { %3167 = vbcast.lane.b32.xlu1 %v3161_v2, 264  ;;  %3163 = vbcast.lane.b32.xlu0 %v3161_v2, 256 }
 0x483   : > { %3178 = vbcast.lane.b32.xlu1 %v3172_v7, 264  ;;  %3174 = vbcast.lane.b32.xlu0 %v3172_v7, 256 }
 0x4d9   : > { %v3102_v54 = vpop.permute.xlu1 %3101  ;;  %v3098_v17 = vpop.permute.xlu0 %3097 }
 0x4da   : > { %v3183_v56 = vmul.f32 %v3181_v22, %v3102_v54  ;;  %v3182_v57 = vmul.f32 %v3180_v33, %v3098_v17 }
 0x4dc   : > { %v3198_v42 = vmax.f32 %v3182_v57, %v3183_v56 }
 0x4dd   : > { %v3113_v55 = vpop.permute.xlu1 %3112  ;;  %v3109_v13 = vpop.permute.xlu0 %3108 }
 0x4de   : > { %v3185_v4 = vmul.f32 %v3181_v22, %v3113_v55  ;;  %v3184_v36 = vmul.f32 %v3180_v33, %v3109_v13  ;;  %v3199_v9 = vrot.slane %v3198_v42, 4 }
 0x4e0   : > { %v3205_v18 = vmax.f32 %v3184_v36, %v3185_v4  ;;  %v3200_v28 = vmax.f32 %v3198_v42, %v3199_v9 }
 0x4e1   : > { %v3124_v58 = vpop.permute.xlu1 %3123  ;;  %v3120_v39 = vpop.permute.xlu0 %3119 }
 0x4e2   : > { %v3187_v60 = vmul.f32 %v3181_v22, %v3124_v58  ;;  %v3186_v61 = vmul.f32 %v3180_v33, %v3120_v39  ;;  %v3206_v8 = vrot.slane %v3205_v18, 4  ;;  %v3201_v31 = vrot.slane %v3200_v28, 2 }
 0x4e4   : > { %v3212_v63 = vmax.f32 %v3186_v61, %v3187_v60  ;;  %v3207_v20 = vmax.f32 %v3205_v18, %v3206_v8  ;;  %v3202_v30 = vmax.f32 %v3200_v28, %v3201_v31 }
 0x4e5   : > { %v3135_v5 = vpop.permute.xlu1 %3134  ;;  %v3131_v48 = vpop.permute.xlu0 %3130 }
 0x4e6   : > { %v3189_v6 = vmul.f32 %v3181_v22, %v3135_v5  ;;  %v3188_v0 = vmul.f32 %v3180_v33, %v3131_v48  ;;  %v3213_v10 = vrot.slane %v3212_v63, 4  ;;  %v3208_v27 = vrot.slane %v3207_v20, 2 }
 0x4e7   : > { %v3203_v56 = vrot.slane %v3202_v30, 1 }
 0x4e8   : > { %v3219_v11 = vmax.f32 %v3188_v0, %v3189_v6  ;;  %v3214_v32 = vmax.f32 %v3212_v63, %v3213_v10  ;;  %v3209_v45 = vmax.f32 %v3207_v20, %v3208_v27 }
 0x4e9   : > { %v3146_v52 = vpop.permute.xlu1 %3145  ;;  %v3142_v12 = vpop.permute.xlu0 %3141 }
 0x4ea   : > { %v3191_v14 = vmul.f32 %v3181_v22, %v3146_v52  ;;  %v3190_v16 = vmul.f32 %v3180_v33, %v3142_v12  ;;  %v3220_v59 = vrot.slane %v3219_v11, 4  ;;  %v3215_v34 = vrot.slane %v3214_v32, 2 }
 0x4eb   : > { %v3210_v17 = vrot.slane %v3209_v45, 1 }
 0x4ec   : > { %v3226_v21 = vmax.f32 %v3190_v16, %v3191_v14  ;;  %v3221_v19 = vmax.f32 %v3219_v11, %v3220_v59  ;;  %v3216_v47 = vmax.f32 %v3214_v32, %v3215_v34 }
 0x4ed   : > { %v3157_v23 = vpop.permute.xlu1 %3156  ;;  %v3153_v24 = vpop.permute.xlu0 %3152  ;;  %v3211_v61 = vmax.f32 %v3209_v45, %v3210_v17 }
 0x4ee   : > { %v3227_v25 = vrot.slane %v3226_v21, 4  ;;  %v3193_v1 = vmul.f32 %v3181_v22, %v3157_v23  ;;  %v3192_v26 = vmul.f32 %v3180_v33, %v3153_v24  ;;  %v3222_v41 = vrot.slane %v3221_v19, 2 }
 0x4ef   : > { %v3217_v4 = vrot.slane %v3216_v47, 1 }
 0x4f0   : > { %v3228_v29 = vmax.f32 %v3226_v21, %v3227_v25  ;;  %v3233_v35 = vmax.f32 %v3192_v26, %v3193_v1  ;;  %v3223_v51 = vmax.f32 %v3221_v19, %v3222_v41 }
 0x4f1   : > { %v3168_v38 = vpop.permute.xlu1 %3167  ;;  %v3164_v40 = vpop.permute.xlu0 %3163 }
 0x4f2   : > { %v3195_v62 = vmul.f32 %v3181_v22, %v3168_v38  ;;  %v3194_v43 = vmul.f32 %v3180_v33, %v3164_v40  ;;  %v3229_v44 = vrot.slane %v3228_v29, 2  ;;  %v3234_v37 = vrot.slane %v3233_v35, 4 }
 0x4f3   : > { %v3224_v57 = vrot.slane %v3223_v51, 1 }
 0x4f4   : > { %v3240_v46 = vmax.f32 %v3194_v43, %v3195_v62  ;;  %v3235_v49 = vmax.f32 %v3233_v35, %v3234_v37  ;;  %v3230_v7 = vmax.f32 %v3228_v29, %v3229_v44 }
 0x4f5   : > { %v3179_v50 = vpop.permute.xlu1 %3178  ;;  %v3175_v15 = vpop.permute.xlu0 %3174  ;;  %v3225_v5 = vmax.f32 %v3223_v51, %v3224_v57 }
 0x4f6   : > { %v3241_v53 = vrot.slane %v3240_v46, 4  ;;  %v3197_v3 = vmul.f32 %v3181_v22, %v3179_v50  ;;  %v3196_v2 = vmul.f32 %v3180_v33, %v3175_v15  ;;  %v3236_v54 = vrot.slane %v3235_v49, 2 }
 0x4f7   : > { %v3231_v60 = vrot.slane %v3230_v7, 1  ;;  %v3218_v22 = vmax.f32 %v3216_v47, %v3217_v4  ;;  %v3204_v33 = vmax.f32 %v3202_v30, %v3203_v56 }
 0x4f8   : > { %v3242_v55 = vmax.f32 %v3240_v46, %v3241_v53  ;;  %v3247_v13 = vmax.f32 %v3196_v2, %v3197_v3  ;;  %v3237_v36 = vmax.f32 %v3235_v49, %v3236_v54 }
 0x4f9   : > { %v3232_v0 = vmax.f32 %v3230_v7, %v3231_v60  ;;  %v3262_v8 = vsel %vm2916_vm10, %v3211_v61, %v3204_v33 }
 0x4fa   : > { %v3243_v58 = vrot.slane %v3242_v55, 2  ;;  %v3248_v39 = vrot.slane %v3247_v13, 4  ;;  %v3238_v18 = vrot.slane %v3237_v36, 1  ;;  %v3263_v11 = vsel %vm2918_vm11, %v3218_v22, %v3262_v8 }
 0x4fb   : > { %v3264_v12 = vsel %vm2920_vm12, %v3225_v5, %v3263_v11 }
 0x4fc   : > { %v3244_v42 = vmax.f32 %v3242_v55, %v3243_v58  ;;  %v3249_v63 = vmax.f32 %v3247_v13, %v3248_v39  ;;  %v3239_v9 = vmax.f32 %v3237_v36, %v3238_v18  ;;  %v3265_v16 = vsel %vm2922_vm13, %v3232_v0, %v3264_v12 }
 0x4fe   : > { %v3245_v48 = vrot.slane %v3244_v42, 1  ;;  %v3250_v6 = vrot.slane %v3249_v63, 2  ;;  %v3266_v20 = vsel %vm2924_vm14, %v3239_v9, %v3265_v16 }
 0x500   : > { %v3251_v10 = vmax.f32 %v3249_v63, %v3250_v6  ;;  %v3246_v52 = vmax.f32 %v3244_v42, %v3245_v48 }
 0x502   : > { %v3252_v14 = vrot.slane %v3251_v10, 1  ;;  %v3267_v21 = vsel %vm2926_vm15, %v3246_v52, %v3266_v20 }
 0x504   : > { %v3253_v59 = vmax.f32 %v3251_v10, %v3252_v14 }
 0x506   : > { %v3268_v28 = vsel %vm2928_vm1, %v3253_v59, %v3267_v21 }
 0x507   : > { %3270 = vst [vmem:[%s337_s29] sm:$0xff] %v3268_v28 }
 0x508   : > { %4260 = shalt.err (!%p4257_p11)
}
 0x509   : > { %s4261_s13 = scalar_lea.hbm %s5160_s16, 128  ;;  %s4265_s24 = scalar_lea.hbm %s5213_s8, 256 }
 0x50a   : > { %p4262_p13 = scmp.ne.s32.totalorder %s5160_s16, %s4261_s13  ;;  %p4266_p12 = scmp.lt.u32.totalorder %s5160_s16, %s5213_s8 }
 0x50b   : > { %p4267_p3 = scmp.lt.u32.totalorder %s4265_s24, %s4261_s13  ;;  %p4269_p8 = scmp.lt.u32.totalorder %s4261_s13, %s5160_s16 }
 0x50c   : > { %p4263_p2 = pnand %p4262_p13, %p5238_p9 }
 0x50d   : > { %p4268_p7 = por %p4267_p3, %p4266_p12 }
 0x50e   : > { %p4264_p6 = pneg %p4263_p2 }
 0x50f   : > { %p4270_p10 = por %p4269_p8, %p4268_p7 }
 0x511   : > { %p4271_p1 = pnand %p4270_p10, %p4264_p6 }
 0x513   : > { %4274 = shalt.err (!%p4271_p1)
}
 0x514   : > { %4127 = dma.vmem_to_hbm [thread:$0]  (%p5238_p9), %s5162_s20, 128, %s5160_s16, %s3272_s9  }
 0x515 PF: > { %s3297_s29 = sand.u32 1, %s4305_s27   ;;  %p5239_p4 = scmp.ne.s32.totalorder %s5226_s18, 0 }
 0x516   : > { %p5240_p0 = scmp.ge.s32.totalorder %s4317_s30, 2  ;;  %s3298_s23 = scalar_lea.sflag [#allocation4], %s3297_s29 }
 0x518   : > { %p4138_p5 = pnand %p5240_p0, %p5239_p4 }
 0x51a   : > { %4300 = dma.done.wait (!%p4138_p5), %s3298_s23, 128  }
 0x51b   : > { %4302 = vsyncadd (!%p4138_p5), %s3298_s23, 4294967168  ;;  %s5241_s12 = sld [smem:[#allocation11_spill]]  ;;  %s5242_s29 = sld [smem:[#allocation12_spill]] }
 0x51c   : > { %p22_p11 = scmp.ge.s32.totalorder %s4398_s11, 4   ;;  %s5243_s27 = smov %s4309_s28 }
 0x51d   : > { %s5245_s30 = smov %s4398_s11 }
 0x51e   :  { %24 = sbr.rel (!%p22_p11) target bundleno = 6 (0x6), region = 113 }
 0x521   : > { %s5244_s28 = smov %s5241_s12 }
 0x525   :  { %3303 = vsyncpa [#allocation3], 1 }
 0x526   :  { %3305 = vsyncpa [#allocation3 + $0x1], 1 }
 0x527   :  { %3306 = vsyncpa [#allocation6], 1 }
 0x528   :  { %3307 = vsyncpa [#allocation4], 1 }
 0x529   :  { %3309 = vsyncpa [#allocation4 + $0x1], 1 }

</bundles_post_ra>
